<compile_context>
chip_gen: v7x
topology: tpu7x:2x2x1
jax: 0.10.0
libtpu: 0.0.40
codegen_flags: <defaults>
</compile_context>

<pallas_src>
import functools

import numpy as np
import jax
import jax.numpy as jnp
from jax import lax
from jax.experimental import pallas as pl
from jax.experimental.pallas import tpu as pltpu


# ----------------------------------------------------------------------------
# Host-side constant builders
# ----------------------------------------------------------------------------
def _bilinear_matrix(n_out, n_in):
    """1-D bilinear interpolation matrix, PyTorch align_corners=True."""
    U = np.zeros((n_out, n_in), dtype=np.float32)
    if n_out == 1 or n_in == 1:
        U[:, 0] = 1.0
        return U
    scale = (n_in - 1) / (n_out - 1)
    for o in range(n_out):
        src = o * scale
        i0 = min(int(np.floor(src)), n_in - 1)
        i1 = min(i0 + 1, n_in - 1)
        f = src - i0
        U[o, i0] += 1.0 - f
        U[o, i1] += f
    return U


def _upsample_pad_matrix(H2, W2, H1, W1):
    """(H2*W2, H1*W1) matrix = bilinear x2 upsample of (H1,W1) followed by
    F.pad (or crop, if diff is negative) to (H2, W2)."""
    H2u, W2u = 2 * H1, 2 * W1
    Uh = _bilinear_matrix(H2u, H1)                    # (H2u, H1)
    Uw = _bilinear_matrix(W2u, W1)                    # (W2u, W1)
    py = (H2 - H2u) // 2                              # top pad (may be negative)
    px = (W2 - W2u) // 2                              # left pad (may be negative)
    Ph = np.zeros((H2, H1), np.float32)
    for o in range(H2):
        i = o - py
        if 0 <= i < H2u:
            Ph[o] = Uh[i]
    Pw = np.zeros((W2, W1), np.float32)
    for o in range(W2):
        i = o - px
        if 0 <= i < W2u:
            Pw[o] = Uw[i]
    return np.kron(Ph, Pw)                            # (H2*W2, H1*W1)


# ----------------------------------------------------------------------------
# Fused kernel: upsample(x1) + pad + concat(x2, x1up) + DoubleConv, per batch n
# ----------------------------------------------------------------------------
def _up_double_conv_kernel(x1_ref, x2_ref, up_ref, cm_ref, w1_ref, w2_ref,
                           o_ref, act_ref, *,
                           C1, C2, Cmid, Cout, H2, W2, OFF, eps=1e-5):
    Cin = C1 + C2
    HW = H2 * W2
    Crows, PADW = act_ref.shape
    inv_hw = 1.0 / float(HW)

    ml = cm_ref[0:1, :]          # (1, HW) valid where w > 0      (taps with kx == 0)
    mr = cm_ref[1:2, :]          # (1, HW) valid where w < W2 - 1 (taps with kx == 2)

    # ---- zero the lane halos; interior is fully rewritten every step (no
    #      program_id guard -> safe if the parallel batch axis is core-sharded)
    act_ref[:, 0:OFF] = jnp.zeros((Crows, OFF), jnp.float32)
    act_ref[:, OFF + HW:PADW] = jnp.zeros((Crows, PADW - OFF - HW), jnp.float32)

    # ---- concat( x2 , upsample+pad(x1) ) straight into the flat activation
    act_ref[0:C2, OFF:OFF + HW] = x2_ref[0]
    # upsample + F.pad folded into one matrix -> one lane-dense matmul, one
    # contiguous store of all C1 channels.
    act_ref[C2:Cin, OFF:OFF + HW] = jnp.dot(
        x1_ref[0], up_ref[...], preferred_element_type=jnp.float32)

    def conv3x3(cin, w_flat):
        # 9-tap accumulate on the flat layout; each tap is a static lane
        # window of the halo'd activation rows [0:cin].
        cout = w_flat.shape[0]
        acc = jnp.zeros((cout, HW), jnp.float32)
        for ky in range(3):
            for kx in range(3):
                t = ky * 3 + kx
                s = (ky - 1) * W2 + (kx - 1)
                tap = act_ref[0:cin, OFF + s:OFF + s + HW]      # (cin, HW)
                if kx == 0:
                    tap = tap * ml
                elif kx == 2:
                    tap = tap * mr
                acc = acc + jnp.dot(w_flat[:, t * cin:(t + 1) * cin], tap,
                                    preferred_element_type=jnp.float32)
        return acc

    def inorm_relu(a):
        # two-pass centered statistics (robust); conv bias omitted because it
        # is exactly cancelled by the affine-free InstanceNorm mean removal.
        m = jnp.sum(a, axis=1, keepdims=True) * inv_hw
        c = a - m
        v = jnp.sum(c * c, axis=1, keepdims=True) * inv_hw
        return jnp.maximum(c * lax.rsqrt(v + eps), 0.0)

    y1 = inorm_relu(conv3x3(Cin, w1_ref[...]))                  # (Cmid, HW)

    # re-"pad" the intermediate activation by reusing rows [0, Cmid); their
    # lane halos are already zero.
    act_ref[0:Cmid, OFF:OFF + HW] = y1

    y2 = inorm_relu(conv3x3(Cmid, w2_ref[...]))                 # (Cout, HW)
    o_ref[0] = y2                                               # lane-dense store


# ----------------------------------------------------------------------------
# Up.forward  (NCHW in / NCHW out, PyTorch convention)
# ----------------------------------------------------------------------------
def up_forward(x1_nchw, x2_nchw, params):
    x1 = x1_nchw.astype(jnp.float32)
    x2 = x2_nchw.astype(jnp.float32)
    N, C1, H1, W1 = x1.shape
    N2, C2, H2, W2 = x2.shape
    assert N == N2
    Cin = C1 + C2
    HW = H2 * W2

    w1 = params["w1"].astype(jnp.float32)        # (3, 3, Cin,  Cmid)  HWIO
    w2 = params["w2"].astype(jnp.float32)        # (3, 3, Cmid, Cout)  HWIO
    Cmid, Cout = w1.shape[-1], w2.shape[-1]
    # NOTE: b1/b2 are intentionally not passed (no-op before affine-free
    # InstanceNorm) -> fewer DMAs and broadcast-adds.

    # Flat tap-major / channel-minor weights: column t*Cin + ci <-> (ky,kx,ci).
    w1f = jnp.transpose(w1, (3, 0, 1, 2)).reshape(Cmid, 9 * Cin)
    w2f = jnp.transpose(w2, (3, 0, 1, 2)).reshape(Cout, 9 * Cmid)

    # Combined upsample + pad matrix and column-wrap masks (host constants).
    upmat = jnp.asarray(_upsample_pad_matrix(H2, W2, H1, W1).T)   # (H1*W1, HW)
    col = np.arange(HW, dtype=np.int64) % W2
    cmask = jnp.asarray(np.stack([(col > 0), (col < W2 - 1)]).astype(np.float32))

    OFF = ((W2 + 1 + 127) // 128) * 128        # lane-aligned halo width
    PADW = HW + 2 * OFF
    Crows = max(Cin, Cmid)

    x1f = x1.reshape(N, C1, H1 * W1)           # free reshapes in the wrapper
    x2f = x2.reshape(N, C2, HW)

    kernel = functools.partial(
        _up_double_conv_kernel,
        C1=C1, C2=C2, Cmid=Cmid, Cout=Cout, H2=H2, W2=W2, OFF=OFF)

    flops_per_n = (2 * C1 * (H1 * W1) * HW       # upsample matmul
                   + 2 * 9 * Cin * Cmid * HW     # conv1
                   + 2 * 9 * Cmid * Cout * HW)   # conv2
    bytes_accessed = 4 * (x1f.size + x2f.size + upmat.size + cmask.size
                          + w1f.size + w2f.size + N * Cout * HW)

    out = pl.pallas_call(
        kernel,
        out_shape=jax.ShapeDtypeStruct((N, Cout, HW), jnp.float32),
        grid=(N,),
        in_specs=[
            pl.BlockSpec((1, C1, H1 * W1), lambda n: (n, 0, 0)),
            pl.BlockSpec((1, C2, HW), lambda n: (n, 0, 0)),
            pl.BlockSpec((H1 * W1, HW), lambda n: (0, 0)),
            pl.BlockSpec((2, HW), lambda n: (0, 0)),
            pl.BlockSpec((Cmid, 9 * Cin), lambda n: (0, 0)),
            pl.BlockSpec((Cout, 9 * Cmid), lambda n: (0, 0)),
        ],
        out_specs=pl.BlockSpec((1, Cout, HW), lambda n: (n, 0, 0)),
        scratch_shapes=[
            pltpu.VMEM((Crows, PADW), jnp.float32),   # flat halo'd activation
        ],
        compiler_params=pltpu.CompilerParams(
            dimension_semantics=("parallel",),
            vmem_limit_bytes=32 * 1024 * 1024),
        cost_estimate=pl.CostEstimate(
            flops=int(N * flops_per_n),
            transcendentals=int(N * (Cmid + Cout)),
            bytes_accessed=int(bytes_accessed)),
    )(x1f, x2f, upmat, cmask, w1f, w2f)

    return out.reshape(N, Cout, H2, W2)


# ----------------------------------------------------------------------------
# Pure-JAX reference (keeps the conv biases -> proves the in-kernel omission
# is mathematically exact)
# ----------------------------------------------------------------------------
def _instance_norm_nchw(x, eps=1e-5):
    mean = jnp.mean(x, axis=(2, 3), keepdims=True)
    var = jnp.mean((x - mean) ** 2, axis=(2, 3), keepdims=True)
    return (x - mean) / jnp.sqrt(var + eps)


def up_forward_reference(x1, x2, params):
    N, C1, H1, W1 = x1.shape
    H2u, W2u = 2 * H1, 2 * W1
    Uh = jnp.asarray(_bilinear_matrix(H2u, H1))
    Uw = jnp.asarray(_bilinear_matrix(W2u, W1))
    x1u = jnp.einsum('oh,nchw->ncow', Uh, x1, precision=lax.Precision.HIGHEST)
    x1u = jnp.einsum('pw,ncow->ncop', Uw, x1u, precision=lax.Precision.HIGHEST)
    diffY = x2.shape[2] - x1u.shape[2]
    diffX = x2.shape[3] - x1u.shape[3]
    x1u = jnp.pad(x1u, ((0, 0), (0, 0),
                        (diffY // 2, diffY - diffY // 2),
                        (diffX // 2, diffX - diffX // 2)))
    x = jnp.concatenate([x2, x1u], axis=1)

    def conv(v, w, b):
        y = lax.conv_general_dilated(v, w, (1, 1), 'SAME',
                                     dimension_numbers=('NCHW', 'HWIO', 'NCHW'),
                                     precision=lax.Precision.HIGHEST)
        return y + b[None, :, None, None]

    y = jnp.maximum(_instance_norm_nchw(conv(x, params["w1"], params["b1"])), 0.0)
    y = jnp.maximum(_instance_norm_nchw(conv(y, params["w2"], params["b2"])), 0.0)
    return y


if __name__ == "__main__":
    key = jax.random.PRNGKey(0)
    k1, k2, kw1, kb1, kw2, kb2 = jax.random.split(key, 6)

    # Up(in_channels=8, out_channels=4, bilinear=True)
    N, C1, H1, W1 = 2, 4, 8, 8       # x1: low-res feature map
    C2 = 4                           # x2: skip connection
    in_channels = C1 + C2            # 8 (after concat)
    mid_channels = in_channels // 2  # 4
    out_channels = 4

    x1 = jax.random.normal(k1, (N, C1, H1, W1), jnp.float32)
    x2 = jax.random.normal(k2, (N, C2, 2 * H1, 2 * W1), jnp.float32)

    params = {
        "w1": 0.1 * jax.random.normal(kw1, (3, 3, in_channels, mid_channels), jnp.float32),
        "b1": 0.01 * jax.random.normal(kb1, (mid_channels,), jnp.float32),
        "w2": 0.1 * jax.random.normal(kw2, (3, 3, mid_channels, out_channels), jnp.float32),
        "b2": 0.01 * jax.random.normal(kb2, (out_channels,), jnp.float32),
    }

    out = jax.block_until_ready(up_forward(x1, x2, params))
    ref = up_forward_reference(x1, x2, params)
    assert out.shape == (N, out_channels, 2 * H1, 2 * W1), out.shape
    err = float(jnp.max(jnp.abs(out - ref)))
    assert err < 2e-2, f"max abs err {err}"

    print("KERNEL_OK")
</pallas_src>

<mosaic_0001>
module attributes {stable_mosaic.version = 11 : i64} {
  func.func @_up_double_conv_kernel(%arg0: i32, %arg1: memref<1x4x64xf32, #tpu.memory_space<vmem>>, %arg2: memref<1x4x256xf32, #tpu.memory_space<vmem>>, %arg3: memref<64x256xf32, #tpu.memory_space<vmem>>, %arg4: memref<2x256xf32, #tpu.memory_space<vmem>>, %arg5: memref<4x72xf32, #tpu.memory_space<vmem>>, %arg6: memref<4x36xf32, #tpu.memory_space<vmem>>, %arg7: memref<1x4x256xf32, #tpu.memory_space<vmem>>, %arg8: memref<8x512xf32, #tpu.memory_space<vmem>>) attributes {dimension_semantics = [#tpu.dimension_semantics<parallel>], iteration_bounds = array<i64: 2>, scalar_prefetch = 0 : i64, scratch_operands = 1 : i64, tpu.core_type = #tpu.core_type<tc>, window_params = [{transform_indices = @transform_0, window_bounds = array<i64: 1, 4, 64>}, {transform_indices = @transform_1, window_bounds = array<i64: 1, 4, 256>}, {pipeline_mode = #tpu.pipeline_mode<synchronous>, transform_indices = @transform_2, window_bounds = array<i64: 64, 256>}, {pipeline_mode = #tpu.pipeline_mode<synchronous>, transform_indices = @transform_3, window_bounds = array<i64: 2, 256>}, {pipeline_mode = #tpu.pipeline_mode<synchronous>, transform_indices = @transform_4, window_bounds = array<i64: 4, 72>}, {pipeline_mode = #tpu.pipeline_mode<synchronous>, transform_indices = @transform_5, window_bounds = array<i64: 4, 36>}, {transform_indices = @transform_6, window_bounds = array<i64: 1, 4, 256>}]} {
    %c0 = arith.constant 0 : index
    %c0_0 = arith.constant 0 : index
    %0 = vector.load %arg4[%c0, %c0_0] : memref<2x256xf32, #tpu.memory_space<vmem>>, vector<1x256xf32>
    %c1 = arith.constant 1 : index
    %c0_1 = arith.constant 0 : index
    %1 = vector.load %arg4[%c1, %c0_1] : memref<2x256xf32, #tpu.memory_space<vmem>>, vector<1x256xf32>
    %cst = arith.constant 0.000000e+00 : f32
    %2 = vector.broadcast %cst : f32 to vector<8x128xf32>
    %c0_2 = arith.constant 0 : index
    %c0_3 = arith.constant 0 : index
    %3 = vector.load %arg8[%c0_2, %c0_3] : memref<8x512xf32, #tpu.memory_space<vmem>>, vector<8x128xf32>
    tpu.vector_store %arg8[%c0_2, %c0_3], %2 {strides = array<i32>} : memref<8x512xf32, #tpu.memory_space<vmem>>, vector<8x128xf32>,
    %cst_4 = arith.constant 0.000000e+00 : f32
    %4 = vector.broadcast %cst_4 : f32 to vector<8x128xf32>
    %c0_5 = arith.constant 0 : index
    %c384 = arith.constant 384 : index
    %5 = vector.load %arg8[%c0_5, %c384] : memref<8x512xf32, #tpu.memory_space<vmem>>, vector<8x128xf32>
    tpu.vector_store %arg8[%c0_5, %c384], %4 {strides = array<i32>} : memref<8x512xf32, #tpu.memory_space<vmem>>, vector<8x128xf32>,
    %c0_6 = arith.constant 0 : index
    %c0_7 = arith.constant 0 : index
    %c0_8 = arith.constant 0 : index
    %6 = vector.load %arg2[%c0_6, %c0_7, %c0_8] : memref<1x4x256xf32, #tpu.memory_space<vmem>>, vector<1x4x256xf32>
    %7 = vector.shape_cast %6 : vector<1x4x256xf32> to vector<4x256xf32>
    %c0_9 = arith.constant 0 : index
    %c128 = arith.constant 128 : index
    %8 = vector.load %arg8[%c0_9, %c128] : memref<8x512xf32, #tpu.memory_space<vmem>>, vector<4x256xf32>
    tpu.vector_store %arg8[%c0_9, %c128], %7 {strides = array<i32>} : memref<8x512xf32, #tpu.memory_space<vmem>>, vector<4x256xf32>,
    %c0_10 = arith.constant 0 : index
    %c0_11 = arith.constant 0 : index
    %c0_12 = arith.constant 0 : index
    %9 = vector.load %arg1[%c0_10, %c0_11, %c0_12] : memref<1x4x64xf32, #tpu.memory_space<vmem>>, vector<1x4x64xf32>
    %10 = vector.shape_cast %9 : vector<1x4x64xf32> to vector<4x64xf32>
    %c0_13 = arith.constant 0 : index
    %c0_14 = arith.constant 0 : index
    %11 = vector.load %arg3[%c0_13, %c0_14] : memref<64x256xf32, #tpu.memory_space<vmem>>, vector<64x256xf32>
    %cst_15 = arith.constant dense<0.000000e+00> : vector<4x256xf32>
    %12 = tpu.matmul %10, %11, %cst_15 {dimension_numbers = #tpu.dot_dimension_numbers<[1], [0], [0], [1], [0, 0, 1, 1], [], []>} : vector<4x64xf32>, vector<64x256xf32>, vector<4x256xf32> -> vector<4x256xf32>
    %c4 = arith.constant 4 : index
    %c128_16 = arith.constant 128 : index
    %13 = vector.load %arg8[%c4, %c128_16] : memref<8x512xf32, #tpu.memory_space<vmem>>, vector<4x256xf32>
    tpu.vector_store %arg8[%c4, %c128_16], %12 {strides = array<i32>} : memref<8x512xf32, #tpu.memory_space<vmem>>, vector<4x256xf32>,
    %c0_17 = arith.constant 0 : index
    %c0_18 = arith.constant 0 : index
    %14 = vector.load %arg5[%c0_17, %c0_18] : memref<4x72xf32, #tpu.memory_space<vmem>>, vector<4x72xf32>
    %cst_19 = arith.constant 0.000000e+00 : f32
    %15 = vector.broadcast %cst_19 : f32 to vector<4x256xf32>
    %c0_20 = arith.constant 0 : index
    %c111 = arith.constant 111 : index
    %16 = vector.load %arg8[%c0_20, %c111] : memref<8x512xf32, #tpu.memory_space<vmem>>, vector<8x256xf32>
    %17 = vector.broadcast %0 : vector<1x256xf32> to vector<8x256xf32>
    %18 = arith.mulf %16, %17 : vector<8x256xf32>
    %19 = vector.extract_strided_slice %14 {offsets = [0, 0], sizes = [4, 8], strides = [1, 1]} : vector<4x72xf32> to vector<4x8xf32>
    %cst_21 = arith.constant dense<0.000000e+00> : vector<4x256xf32>
    %20 = tpu.matmul %19, %18, %cst_21 {dimension_numbers = #tpu.dot_dimension_numbers<[1], [0], [0], [1], [0, 0, 1, 1], [], []>} : vector<4x8xf32>, vector<8x256xf32>, vector<4x256xf32> -> vector<4x256xf32>
    %21 = arith.addf %15, %20 : vector<4x256xf32>
    %c0_22 = arith.constant 0 : index
    %c112 = arith.constant 112 : index
    %22 = vector.load %arg8[%c0_22, %c112] : memref<8x512xf32, #tpu.memory_space<vmem>>, vector<8x256xf32>
    %23 = vector.extract_strided_slice %14 {offsets = [0, 8], sizes = [4, 8], strides = [1, 1]} : vector<4x72xf32> to vector<4x8xf32>
    %cst_23 = arith.constant dense<0.000000e+00> : vector<4x256xf32>
    %24 = tpu.matmul %23, %22, %cst_23 {dimension_numbers = #tpu.dot_dimension_numbers<[1], [0], [0], [1], [0, 0, 1, 1], [], []>} : vector<4x8xf32>, vector<8x256xf32>, vector<4x256xf32> -> vector<4x256xf32>
    %25 = arith.addf %21, %24 : vector<4x256xf32>
    %c0_24 = arith.constant 0 : index
    %c113 = arith.constant 113 : index
    %26 = vector.load %arg8[%c0_24, %c113] : memref<8x512xf32, #tpu.memory_space<vmem>>, vector<8x256xf32>
    %27 = vector.broadcast %1 : vector<1x256xf32> to vector<8x256xf32>
    %28 = arith.mulf %26, %27 : vector<8x256xf32>
    %29 = vector.extract_strided_slice %14 {offsets = [0, 16], sizes = [4, 8], strides = [1, 1]} : vector<4x72xf32> to vector<4x8xf32>
    %cst_25 = arith.constant dense<0.000000e+00> : vector<4x256xf32>
    %30 = tpu.matmul %29, %28, %cst_25 {dimension_numbers = #tpu.dot_dimension_numbers<[1], [0], [0], [1], [0, 0, 1, 1], [], []>} : vector<4x8xf32>, vector<8x256xf32>, vector<4x256xf32> -> vector<4x256xf32>
    %31 = arith.addf %25, %30 : vector<4x256xf32>
    %c0_26 = arith.constant 0 : index
    %c127 = arith.constant 127 : index
    %32 = vector.load %arg8[%c0_26, %c127] : memref<8x512xf32, #tpu.memory_space<vmem>>, vector<8x256xf32>
    %33 = vector.broadcast %0 : vector<1x256xf32> to vector<8x256xf32>
    %34 = arith.mulf %32, %33 : vector<8x256xf32>
    %35 = vector.extract_strided_slice %14 {offsets = [0, 24], sizes = [4, 8], strides = [1, 1]} : vector<4x72xf32> to vector<4x8xf32>
    %cst_27 = arith.constant dense<0.000000e+00> : vector<4x256xf32>
    %36 = tpu.matmul %35, %34, %cst_27 {dimension_numbers = #tpu.dot_dimension_numbers<[1], [0], [0], [1], [0, 0, 1, 1], [], []>} : vector<4x8xf32>, vector<8x256xf32>, vector<4x256xf32> -> vector<4x256xf32>
    %37 = arith.addf %31, %36 : vector<4x256xf32>
    %c0_28 = arith.constant 0 : index
    %c128_29 = arith.constant 128 : index
    %38 = vector.load %arg8[%c0_28, %c128_29] : memref<8x512xf32, #tpu.memory_space<vmem>>, vector<8x256xf32>
    %39 = vector.extract_strided_slice %14 {offsets = [0, 32], sizes = [4, 8], strides = [1, 1]} : vector<4x72xf32> to vector<4x8xf32>
    %cst_30 = arith.constant dense<0.000000e+00> : vector<4x256xf32>
    %40 = tpu.matmul %39, %38, %cst_30 {dimension_numbers = #tpu.dot_dimension_numbers<[1], [0], [0], [1], [0, 0, 1, 1], [], []>} : vector<4x8xf32>, vector<8x256xf32>, vector<4x256xf32> -> vector<4x256xf32>
    %41 = arith.addf %37, %40 : vector<4x256xf32>
    %c0_31 = arith.constant 0 : index
    %c129 = arith.constant 129 : index
    %42 = vector.load %arg8[%c0_31, %c129] : memref<8x512xf32, #tpu.memory_space<vmem>>, vector<8x256xf32>
    %43 = vector.broadcast %1 : vector<1x256xf32> to vector<8x256xf32>
    %44 = arith.mulf %42, %43 : vector<8x256xf32>
    %45 = vector.extract_strided_slice %14 {offsets = [0, 40], sizes = [4, 8], strides = [1, 1]} : vector<4x72xf32> to vector<4x8xf32>
    %cst_32 = arith.constant dense<0.000000e+00> : vector<4x256xf32>
    %46 = tpu.matmul %45, %44, %cst_32 {dimension_numbers = #tpu.dot_dimension_numbers<[1], [0], [0], [1], [0, 0, 1, 1], [], []>} : vector<4x8xf32>, vector<8x256xf32>, vector<4x256xf32> -> vector<4x256xf32>
    %47 = arith.addf %41, %46 : vector<4x256xf32>
    %c0_33 = arith.constant 0 : index
    %c143 = arith.constant 143 : index
    %48 = vector.load %arg8[%c0_33, %c143] : memref<8x512xf32, #tpu.memory_space<vmem>>, vector<8x256xf32>
    %49 = vector.broadcast %0 : vector<1x256xf32> to vector<8x256xf32>
    %50 = arith.mulf %48, %49 : vector<8x256xf32>
    %51 = vector.extract_strided_slice %14 {offsets = [0, 48], sizes = [4, 8], strides = [1, 1]} : vector<4x72xf32> to vector<4x8xf32>
    %cst_34 = arith.constant dense<0.000000e+00> : vector<4x256xf32>
    %52 = tpu.matmul %51, %50, %cst_34 {dimension_numbers = #tpu.dot_dimension_numbers<[1], [0], [0], [1], [0, 0, 1, 1], [], []>} : vector<4x8xf32>, vector<8x256xf32>, vector<4x256xf32> -> vector<4x256xf32>
    %53 = arith.addf %47, %52 : vector<4x256xf32>
    %c0_35 = arith.constant 0 : index
    %c144 = arith.constant 144 : index
    %54 = vector.load %arg8[%c0_35, %c144] : memref<8x512xf32, #tpu.memory_space<vmem>>, vector<8x256xf32>
    %55 = vector.extract_strided_slice %14 {offsets = [0, 56], sizes = [4, 8], strides = [1, 1]} : vector<4x72xf32> to vector<4x8xf32>
    %cst_36 = arith.constant dense<0.000000e+00> : vector<4x256xf32>
    %56 = tpu.matmul %55, %54, %cst_36 {dimension_numbers = #tpu.dot_dimension_numbers<[1], [0], [0], [1], [0, 0, 1, 1], [], []>} : vector<4x8xf32>, vector<8x256xf32>, vector<4x256xf32> -> vector<4x256xf32>
    %57 = arith.addf %53, %56 : vector<4x256xf32>
    %c0_37 = arith.constant 0 : index
    %c145 = arith.constant 145 : index
    %58 = vector.load %arg8[%c0_37, %c145] : memref<8x512xf32, #tpu.memory_space<vmem>>, vector<8x256xf32>
    %59 = vector.broadcast %1 : vector<1x256xf32> to vector<8x256xf32>
    %60 = arith.mulf %58, %59 : vector<8x256xf32>
    %61 = vector.extract_strided_slice %14 {offsets = [0, 64], sizes = [4, 8], strides = [1, 1]} : vector<4x72xf32> to vector<4x8xf32>
    %cst_38 = arith.constant dense<0.000000e+00> : vector<4x256xf32>
    %62 = tpu.matmul %61, %60, %cst_38 {dimension_numbers = #tpu.dot_dimension_numbers<[1], [0], [0], [1], [0, 0, 1, 1], [], []>} : vector<4x8xf32>, vector<8x256xf32>, vector<4x256xf32> -> vector<4x256xf32>
    %63 = arith.addf %57, %62 : vector<4x256xf32>
    %cst_39 = arith.constant dense<0.000000e+00> : vector<4xf32>
    %64 = vector.multi_reduction <add>, %63, %cst_39 [1] : vector<4x256xf32> to vector<4xf32>
    %65 = vector.shape_cast %64 : vector<4xf32> to vector<4x1xf32>
    %cst_40 = arith.constant 3.906250e-03 : f32
    %66 = vector.broadcast %cst_40 : f32 to vector<4x1xf32>
    %67 = arith.mulf %65, %66 : vector<4x1xf32>
    %68 = vector.broadcast %67 : vector<4x1xf32> to vector<4x256xf32>
    %69 = arith.subf %63, %68 : vector<4x256xf32>
    %70 = arith.mulf %69, %69 : vector<4x256xf32>
    %cst_41 = arith.constant dense<0.000000e+00> : vector<4xf32>
    %71 = vector.multi_reduction <add>, %70, %cst_41 [1] : vector<4x256xf32> to vector<4xf32>
    %72 = vector.shape_cast %71 : vector<4xf32> to vector<4x1xf32>
    %cst_42 = arith.constant 3.906250e-03 : f32
    %73 = vector.broadcast %cst_42 : f32 to vector<4x1xf32>
    %74 = arith.mulf %72, %73 : vector<4x1xf32>
    %cst_43 = arith.constant 9.99999974E-6 : f32
    %75 = vector.broadcast %cst_43 : f32 to vector<4x1xf32>
    %76 = arith.addf %74, %75 : vector<4x1xf32>
    %77 = math.rsqrt %76 : vector<4x1xf32>
    %78 = vector.broadcast %77 : vector<4x1xf32> to vector<4x256xf32>
    %79 = arith.mulf %69, %78 : vector<4x256xf32>
    %cst_44 = arith.constant 0.000000e+00 : f32
    %80 = vector.broadcast %cst_44 : f32 to vector<4x256xf32>
    %81 = arith.maximumf %79, %80 : vector<4x256xf32>
    %c0_45 = arith.constant 0 : index
    %c128_46 = arith.constant 128 : index
    %82 = vector.load %arg8[%c0_45, %c128_46] : memref<8x512xf32, #tpu.memory_space<vmem>>, vector<4x256xf32>
    tpu.vector_store %arg8[%c0_45, %c128_46], %81 {strides = array<i32>} : memref<8x512xf32, #tpu.memory_space<vmem>>, vector<4x256xf32>,
    %c0_47 = arith.constant 0 : index
    %c0_48 = arith.constant 0 : index
    %83 = vector.load %arg6[%c0_47, %c0_48] : memref<4x36xf32, #tpu.memory_space<vmem>>, vector<4x36xf32>
    %cst_49 = arith.constant 0.000000e+00 : f32
    %84 = vector.broadcast %cst_49 : f32 to vector<4x256xf32>
    %c0_50 = arith.constant 0 : index
    %c111_51 = arith.constant 111 : index
    %85 = vector.load %arg8[%c0_50, %c111_51] : memref<8x512xf32, #tpu.memory_space<vmem>>, vector<4x256xf32>
    %86 = vector.broadcast %0 : vector<1x256xf32> to vector<4x256xf32>
    %87 = arith.mulf %85, %86 : vector<4x256xf32>
    %88 = vector.extract_strided_slice %83 {offsets = [0, 0], sizes = [4, 4], strides = [1, 1]} : vector<4x36xf32> to vector<4x4xf32>
    %cst_52 = arith.constant dense<0.000000e+00> : vector<4x256xf32>
    %89 = tpu.matmul %88, %87, %cst_52 {dimension_numbers = #tpu.dot_dimension_numbers<[1], [0], [0], [1], [0, 0, 1, 1], [], []>} : vector<4x4xf32>, vector<4x256xf32>, vector<4x256xf32> -> vector<4x256xf32>
    %90 = arith.addf %84, %89 : vector<4x256xf32>
    %c0_53 = arith.constant 0 : index
    %c112_54 = arith.constant 112 : index
    %91 = vector.load %arg8[%c0_53, %c112_54] : memref<8x512xf32, #tpu.memory_space<vmem>>, vector<4x256xf32>
    %92 = vector.extract_strided_slice %83 {offsets = [0, 4], sizes = [4, 4], strides = [1, 1]} : vector<4x36xf32> to vector<4x4xf32>
    %cst_55 = arith.constant dense<0.000000e+00> : vector<4x256xf32>
    %93 = tpu.matmul %92, %91, %cst_55 {dimension_numbers = #tpu.dot_dimension_numbers<[1], [0], [0], [1], [0, 0, 1, 1], [], []>} : vector<4x4xf32>, vector<4x256xf32>, vector<4x256xf32> -> vector<4x256xf32>
    %94 = arith.addf %90, %93 : vector<4x256xf32>
    %c0_56 = arith.constant 0 : index
    %c113_57 = arith.constant 113 : index
    %95 = vector.load %arg8[%c0_56, %c113_57] : memref<8x512xf32, #tpu.memory_space<vmem>>, vector<4x256xf32>
    %96 = vector.broadcast %1 : vector<1x256xf32> to vector<4x256xf32>
    %97 = arith.mulf %95, %96 : vector<4x256xf32>
    %98 = vector.extract_strided_slice %83 {offsets = [0, 8], sizes = [4, 4], strides = [1, 1]} : vector<4x36xf32> to vector<4x4xf32>
    %cst_58 = arith.constant dense<0.000000e+00> : vector<4x256xf32>
    %99 = tpu.matmul %98, %97, %cst_58 {dimension_numbers = #tpu.dot_dimension_numbers<[1], [0], [0], [1], [0, 0, 1, 1], [], []>} : vector<4x4xf32>, vector<4x256xf32>, vector<4x256xf32> -> vector<4x256xf32>
    %100 = arith.addf %94, %99 : vector<4x256xf32>
    %c0_59 = arith.constant 0 : index
    %c127_60 = arith.constant 127 : index
    %101 = vector.load %arg8[%c0_59, %c127_60] : memref<8x512xf32, #tpu.memory_space<vmem>>, vector<4x256xf32>
    %102 = vector.broadcast %0 : vector<1x256xf32> to vector<4x256xf32>
    %103 = arith.mulf %101, %102 : vector<4x256xf32>
    %104 = vector.extract_strided_slice %83 {offsets = [0, 12], sizes = [4, 4], strides = [1, 1]} : vector<4x36xf32> to vector<4x4xf32>
    %cst_61 = arith.constant dense<0.000000e+00> : vector<4x256xf32>
    %105 = tpu.matmul %104, %103, %cst_61 {dimension_numbers = #tpu.dot_dimension_numbers<[1], [0], [0], [1], [0, 0, 1, 1], [], []>} : vector<4x4xf32>, vector<4x256xf32>, vector<4x256xf32> -> vector<4x256xf32>
    %106 = arith.addf %100, %105 : vector<4x256xf32>
    %c0_62 = arith.constant 0 : index
    %c128_63 = arith.constant 128 : index
    %107 = vector.load %arg8[%c0_62, %c128_63] : memref<8x512xf32, #tpu.memory_space<vmem>>, vector<4x256xf32>
    %108 = vector.extract_strided_slice %83 {offsets = [0, 16], sizes = [4, 4], strides = [1, 1]} : vector<4x36xf32> to vector<4x4xf32>
    %cst_64 = arith.constant dense<0.000000e+00> : vector<4x256xf32>
    %109 = tpu.matmul %108, %107, %cst_64 {dimension_numbers = #tpu.dot_dimension_numbers<[1], [0], [0], [1], [0, 0, 1, 1], [], []>} : vector<4x4xf32>, vector<4x256xf32>, vector<4x256xf32> -> vector<4x256xf32>
    %110 = arith.addf %106, %109 : vector<4x256xf32>
    %c0_65 = arith.constant 0 : index
    %c129_66 = arith.constant 129 : index
    %111 = vector.load %arg8[%c0_65, %c129_66] : memref<8x512xf32, #tpu.memory_space<vmem>>, vector<4x256xf32>
    %112 = vector.broadcast %1 : vector<1x256xf32> to vector<4x256xf32>
    %113 = arith.mulf %111, %112 : vector<4x256xf32>
    %114 = vector.extract_strided_slice %83 {offsets = [0, 20], sizes = [4, 4], strides = [1, 1]} : vector<4x36xf32> to vector<4x4xf32>
    %cst_67 = arith.constant dense<0.000000e+00> : vector<4x256xf32>
    %115 = tpu.matmul %114, %113, %cst_67 {dimension_numbers = #tpu.dot_dimension_numbers<[1], [0], [0], [1], [0, 0, 1, 1], [], []>} : vector<4x4xf32>, vector<4x256xf32>, vector<4x256xf32> -> vector<4x256xf32>
    %116 = arith.addf %110, %115 : vector<4x256xf32>
    %c0_68 = arith.constant 0 : index
    %c143_69 = arith.constant 143 : index
    %117 = vector.load %arg8[%c0_68, %c143_69] : memref<8x512xf32, #tpu.memory_space<vmem>>, vector<4x256xf32>
    %118 = vector.broadcast %0 : vector<1x256xf32> to vector<4x256xf32>
    %119 = arith.mulf %117, %118 : vector<4x256xf32>
    %120 = vector.extract_strided_slice %83 {offsets = [0, 24], sizes = [4, 4], strides = [1, 1]} : vector<4x36xf32> to vector<4x4xf32>
    %cst_70 = arith.constant dense<0.000000e+00> : vector<4x256xf32>
    %121 = tpu.matmul %120, %119, %cst_70 {dimension_numbers = #tpu.dot_dimension_numbers<[1], [0], [0], [1], [0, 0, 1, 1], [], []>} : vector<4x4xf32>, vector<4x256xf32>, vector<4x256xf32> -> vector<4x256xf32>
    %122 = arith.addf %116, %121 : vector<4x256xf32>
    %c0_71 = arith.constant 0 : index
    %c144_72 = arith.constant 144 : index
    %123 = vector.load %arg8[%c0_71, %c144_72] : memref<8x512xf32, #tpu.memory_space<vmem>>, vector<4x256xf32>
    %124 = vector.extract_strided_slice %83 {offsets = [0, 28], sizes = [4, 4], strides = [1, 1]} : vector<4x36xf32> to vector<4x4xf32>
    %cst_73 = arith.constant dense<0.000000e+00> : vector<4x256xf32>
    %125 = tpu.matmul %124, %123, %cst_73 {dimension_numbers = #tpu.dot_dimension_numbers<[1], [0], [0], [1], [0, 0, 1, 1], [], []>} : vector<4x4xf32>, vector<4x256xf32>, vector<4x256xf32> -> vector<4x256xf32>
    %126 = arith.addf %122, %125 : vector<4x256xf32>
    %c0_74 = arith.constant 0 : index
    %c145_75 = arith.constant 145 : index
    %127 = vector.load %arg8[%c0_74, %c145_75] : memref<8x512xf32, #tpu.memory_space<vmem>>, vector<4x256xf32>
    %128 = vector.broadcast %1 : vector<1x256xf32> to vector<4x256xf32>
    %129 = arith.mulf %127, %128 : vector<4x256xf32>
    %130 = vector.extract_strided_slice %83 {offsets = [0, 32], sizes = [4, 4], strides = [1, 1]} : vector<4x36xf32> to vector<4x4xf32>
    %cst_76 = arith.constant dense<0.000000e+00> : vector<4x256xf32>
    %131 = tpu.matmul %130, %129, %cst_76 {dimension_numbers = #tpu.dot_dimension_numbers<[1], [0], [0], [1], [0, 0, 1, 1], [], []>} : vector<4x4xf32>, vector<4x256xf32>, vector<4x256xf32> -> vector<4x256xf32>
    %132 = arith.addf %126, %131 : vector<4x256xf32>
    %cst_77 = arith.constant dense<0.000000e+00> : vector<4xf32>
    %133 = vector.multi_reduction <add>, %132, %cst_77 [1] : vector<4x256xf32> to vector<4xf32>
    %134 = vector.shape_cast %133 : vector<4xf32> to vector<4x1xf32>
    %cst_78 = arith.constant 3.906250e-03 : f32
    %135 = vector.broadcast %cst_78 : f32 to vector<4x1xf32>
    %136 = arith.mulf %134, %135 : vector<4x1xf32>
    %137 = vector.broadcast %136 : vector<4x1xf32> to vector<4x256xf32>
    %138 = arith.subf %132, %137 : vector<4x256xf32>
    %139 = arith.mulf %138, %138 : vector<4x256xf32>
    %cst_79 = arith.constant dense<0.000000e+00> : vector<4xf32>
    %140 = vector.multi_reduction <add>, %139, %cst_79 [1] : vector<4x256xf32> to vector<4xf32>
    %141 = vector.shape_cast %140 : vector<4xf32> to vector<4x1xf32>
    %cst_80 = arith.constant 3.906250e-03 : f32
    %142 = vector.broadcast %cst_80 : f32 to vector<4x1xf32>
    %143 = arith.mulf %141, %142 : vector<4x1xf32>
    %cst_81 = arith.constant 9.99999974E-6 : f32
    %144 = vector.broadcast %cst_81 : f32 to vector<4x1xf32>
    %145 = arith.addf %143, %144 : vector<4x1xf32>
    %146 = math.rsqrt %145 : vector<4x1xf32>
    %147 = vector.broadcast %146 : vector<4x1xf32> to vector<4x256xf32>
    %148 = arith.mulf %138, %147 : vector<4x256xf32>
    %cst_82 = arith.constant 0.000000e+00 : f32
    %149 = vector.broadcast %cst_82 : f32 to vector<4x256xf32>
    %150 = arith.maximumf %148, %149 : vector<4x256xf32>
    %c0_83 = arith.constant 0 : index
    %c0_84 = arith.constant 0 : index
    %c0_85 = arith.constant 0 : index
    %151 = vector.load %arg7[%c0_83, %c0_84, %c0_85] : memref<1x4x256xf32, #tpu.memory_space<vmem>>, vector<1x4x256xf32>
    %152 = vector.shape_cast %151 : vector<1x4x256xf32> to vector<4x256xf32>
    %153 = vector.shape_cast %150 : vector<4x256xf32> to vector<1x4x256xf32>
    tpu.vector_store %arg7[%c0_83, %c0_84, %c0_85], %153 {strides = array<i32>} : memref<1x4x256xf32, #tpu.memory_space<vmem>>, vector<1x4x256xf32>,
    return
  }
  func.func @transform_0(%arg0: i32) -> (i32, i32, i32) {
    %c0_i32 = arith.constant 0 : i32
    %c0_i32_0 = arith.constant 0 : i32
    %c0_i32_1 = arith.constant 0 : i32
    return %arg0, %c0_i32, %c0_i32_0 : i32, i32, i32
  }
  func.func @transform_1(%arg0: i32) -> (i32, i32, i32) {
    %c0_i32 = arith.constant 0 : i32
    %c0_i32_0 = arith.constant 0 : i32
    %c0_i32_1 = arith.constant 0 : i32
    return %arg0, %c0_i32, %c0_i32_0 : i32, i32, i32
  }
  func.func @transform_2(%arg0: i32) -> (i32, i32) {
    %c0_i32 = arith.constant 0 : i32
    %c0_i32_0 = arith.constant 0 : i32
    %c0_i32_1 = arith.constant 0 : i32
    return %c0_i32, %c0_i32_0 : i32, i32
  }
  func.func @transform_3(%arg0: i32) -> (i32, i32) {
    %c0_i32 = arith.constant 0 : i32
    %c0_i32_0 = arith.constant 0 : i32
    %c0_i32_1 = arith.constant 0 : i32
    return %c0_i32, %c0_i32_0 : i32, i32
  }
  func.func @transform_4(%arg0: i32) -> (i32, i32) {
    %c0_i32 = arith.constant 0 : i32
    %c0_i32_0 = arith.constant 0 : i32
    %c0_i32_1 = arith.constant 0 : i32
    return %c0_i32, %c0_i32_0 : i32, i32
  }
  func.func @transform_5(%arg0: i32) -> (i32, i32) {
    %c0_i32 = arith.constant 0 : i32
    %c0_i32_0 = arith.constant 0 : i32
    %c0_i32_1 = arith.constant 0 : i32
    return %c0_i32, %c0_i32_0 : i32, i32
  }
  func.func @transform_6(%arg0: i32) -> (i32, i32, i32) {
    %c0_i32 = arith.constant 0 : i32
    %c0_i32_0 = arith.constant 0 : i32
    %c0_i32_1 = arith.constant 0 : i32
    return %arg0, %c0_i32, %c0_i32_0 : i32, i32, i32
  }
}

</mosaic_0001>

<bundles_post_ra>
// kernel: tpu_custom_call.1
= control target key start
LH: loop header
LB: loop body
LE: loop exit
PB: predicated region body
PF: predicated region fallthrough
CT: control target
= control target key end

     0   :  { %s3328_s0 = inlined_call_operand.hbm [shape: f32[2,4,64], index: 0, kind: input, shape index: {}]   ;;  %s3329_s1 = inlined_call_operand.hbm [shape: f32[2,4,256], index: 1, kind: input, shape index: {}]   ;;  %s3330_s2 = inlined_call_operand.hbm [shape: f32[64,256], index: 2, kind: input, shape index: {}]   ;;  %s3331_s3 = inlined_call_operand.vmem [shape: f32[2,256], index: 3, kind: input, shape index: {}]   ;;  %s3332_s4 = inlined_call_operand.vmem [shape: f32[4,72], index: 4, kind: input, shape index: {}]   ;;  %s3333_s5 = inlined_call_operand.vmem [shape: f32[4,36], index: 5, kind: input, shape index: {}]   ;;  %s3334_s6 = inlined_call_operand.hbm [shape: f32[2,4,256], index: 6, kind: output, shape index: {}]  }
   0x1   :  { %3339 = sst [smem:[#allocation14_spill]] %s3328_s0 }
   0x2   :  { %3340 = sst [smem:[#allocation15_spill]] %s3330_s2 }
   0x3   :  { %11 = vsyncpa [#allocation4], 0 }
   0x4   :  { %13 = vsyncpa [#allocation4 + $0x1], 0 }
   0x5   :  { %14 = vsyncpa [#allocation7], 0 }
   0x6   :  { %16 = vsyncpa [#allocation7 + $0x1], 0 }
   0x7   :  { %17 = vsyncpa [#allocation5], 0 }
   0x8   :  { %19 = vsyncpa [#allocation5 + $0x1], 0  ;;  %s2750_s21 = smov 0   ;;  %s2752_s22 = smov 0  }
   0x9   :  { %s2754_s23 = smov 0   ;;  %s2756_s24 = smov 0  }
   0xa LB: > { %s2771_s25 = sadd.s32 4294967295, %s2687_s24   ;;  %s2329_s26 = sadd.s32 4294967294, %s2687_s24   ;;  %s2687_s24 = sphi %s2756_s24, %s3361_s24   ;;  %s2683_s23 = sphi %s2754_s23, %s3360_s23   ;;  %s2679_s22 = sphi %s2752_s22, %s3359_s22   ;;  %s2675_s21 = sphi %s2750_s21, %s3358_s21  }
   0xb   : > { %p45_p0 = scmp.ne.s32.totalorder %s2679_s22, %s2675_s21  ;;  %p3335_p1 = scmp.eq.s32.totalorder %s2771_s25, 0 }
   0xc   : > { %p185_p3 = scmp.eq.s32.totalorder %s2329_s26, 1  ;;  %p2330_p5 = scmp.ge.s32.totalorder %s2687_s24, 1 }
   0xd   : > { %p2780_p4 = por %p3335_p1, %p45_p0  ;;  %p192_p7 = scmp.lt.s32.totalorder %s2687_s24, 3 }
   0xe   : > { %p2785_p6 = por %p185_p3, %p45_p0  ;;  %s2689_s30 = smov [#allocation8]  }
   0xf   : > { %s3341_s27 = scalar_select %p2780_p4, 1, 0 }
  0x10   : > { %s3342_s28 = scalar_select %p2785_p6, 1, 0 }
  0x11   : > { %p2790_p8 = pnand %p2330_p5, %p192_p7  ;;  %s204_s7 = sshll.u32 %s2689_s30, 4  ;;  %s2794_s7 = int_to_ptr.vmem [resolvable:$true] %s204_s7 }
  0x12   : > { %s2806_s9 = sadd.s32 1, %s2687_s24   ;;  %s32_s10 = sadd.s32 1, %s2683_s23 }
  0x13   : > { %s3343_s29 = scalar_select %p2790_p8, 1, 0 }
  0x14   : > { %p2446_p9 = pneg %p2790_p8  ;;  %s29_s11 = ssub.s32 %s2687_s24, %s2806_s9 }
  0x15   : > { %s3345_s2 = sld [smem:[#allocation15_spill]] }
  0x16   : > { %p2801_p11 = pnand %p2446_p9, %p3335_p1 }
  0x18   : > { %p2527_p13 = pneg %p2801_p11 }
  0x1b   : > { %s2525_s14 = scalar_lea.hbm %s3345_s2, 2048 }
  0x1c   : > { %p2526_p12 = scmp.ne.s32.totalorder %s3345_s2, %s2525_s14  ;;  %p2532_p5 = scmp.lt.u32.totalorder %s2525_s14, %s3345_s2 }
  0x1e   : > { %p2528_p0 = pnand %p2527_p13, %p2526_p12 }
  0x20   : > { %p2529_p3 = pneg %p2528_p0 }
  0x22   : > { %p2534_p7 = pnand %p2532_p5, %p2529_p3 }
  0x24   : > { %2537 = shalt.err (!%p2534_p7)
}
  0x25   : > { %s2538_s19 = scalar_lea.vmem %s2794_s7, 2048  ;;  %p2546_p2 = scmp.lt.s32.totalorder %s2794_s7, %s2794_s7 }
  0x26   : > { %p2539_p9 = scmp.ne.s32.totalorder %s2794_s7, %s2538_s19  ;;  %p2547_p6 = scmp.lt.s32.totalorder %s2538_s19, %s2538_s19 }
  0x28   : > { %p2541_p10 = pnand %p2539_p9, %p2527_p13  ;;  %p2548_p4 = por %p2547_p6, %p2546_p2 }
  0x2a   : > { %p2542_p1 = pneg %p2541_p10 }
  0x2c   : > { %p2549_p8 = pnand %p2548_p4, %p2542_p1 }
  0x2e   : > { %2552 = shalt.err (!%p2549_p8)
}
  0x2f   : > { %s2690_s20 = smov 256   ;;  %s2691_s26 = smov 16  }
  0x30   : > { %2449 = dma.hbm_to_vmem [thread:$0]  (!%p2801_p11), %s3345_s2, 2048, %s2794_s7, [#allocation7], %s2690_s20, %s2690_s20, %s2691_s26  }
  0x31   : > { %p30_p1 = scmp.eq.s32.totalorder %s29_s11, 0  ;;  %p39_p2 = scmp.ne.s32.totalorder %s2683_s23, %s2679_s22 }
  0x32   : > { %p40_p4 = scmp.eq.s32.totalorder %s2687_s24, 0  ;;  %p2462_p6 = scmp.lt.s32.totalorder %s2687_s24, 2 }
  0x33   : > { %s2837_s13 = scalar_select %p30_p1, %s2683_s23, %s32_s10  }
  0x34   : > { %p41_p8 = por %p40_p4, %p39_p2  ;;  %p3346_p10 = scmp.eq.s32.totalorder %s2771_s25, 1 }
  0x35   : > { %s2846_s15 = sand.u32 1, %s2683_s23   ;;  %s2334_s8 = sshll.u32 %s2687_s24, 6 }
  0x36   : > { %p2841_p12 = por %p3346_p10, %p39_p2  ;;  %s2333_s16 = sshll.u32 %s2846_s15, 2 }
  0x37   : > { %s3348_s0 = sld [smem:[#allocation14_spill]]  ;;  %s231_s10 = scalar_lea.vmem [#allocation3], %s2333_s16 }
  0x38   : > { %s3347_s14 = scalar_select %p2841_p12, 1, 0 }
  0x39   : > { %s238_s18 = sshll.u32 %s231_s10, 4  ;;  %p2855_p11 = pnand %p2462_p6, %p41_p8  ;;  %s2859_s18 = int_to_ptr.vmem [resolvable:$true] %s238_s18 }
  0x3a   : > { %s228_s26 = scalar_lea.sflag [#allocation4], %s2846_s15 }
  0x3b   : > { %p2555_p0 = pneg %p2855_p11 }
  0x3d   : > { %s2853_s11 = scalar_lea.hbm %s3348_s0, %s2334_s8  ;;  %s2558_s16 = scalar_lea.hbm %s3348_s0, 128 }
  0x3e   : > { %s2553_s30 = scalar_lea.hbm %s2853_s11, 64  ;;  %p2559_p7 = scmp.lt.u32.totalorder %s2853_s11, %s3348_s0 }
  0x3f   : > { %p2554_p13 = scmp.ne.s32.totalorder %s2853_s11, %s2553_s30  ;;  %p2560_p9 = scmp.lt.u32.totalorder %s2558_s16, %s2553_s30 }
  0x40   : > { %p2562_p2 = scmp.lt.u32.totalorder %s2553_s30, %s2853_s11 }
  0x41   : > { %p2556_p3 = pnand %p2555_p0, %p2554_p13  ;;  %p2561_p1 = por %p2560_p9, %p2559_p7 }
  0x43   : > { %p2557_p5 = pneg %p2556_p3  ;;  %p2563_p4 = por %p2562_p2, %p2561_p1 }
  0x45   : > { %p2564_p6 = pnand %p2563_p4, %p2557_p5 }
  0x47   : > { %2567 = shalt.err (!%p2564_p6)
}
  0x48   : > { %s2568_s10 = scalar_lea.vmem %s2859_s18, 64  ;;  %s2692_s12 = smov [#allocation3]  }
  0x49   : > { %p2569_p8 = scmp.ne.s32.totalorder %s2859_s18, %s2568_s10  ;;  %s2573_s8 = sshll.u32 %s2692_s12, 4  ;;  %s2574_s8 = int_to_ptr.vmem [resolvable:$false] %s2573_s8 }
  0x4a   : > { %s2575_s7 = scalar_lea.vmem %s2574_s8, 128  ;;  %p2576_p3 = scmp.lt.s32.totalorder %s2859_s18, %s2574_s8 }
  0x4b   : > { %p2571_p10 = pnand %p2569_p8, %p2555_p0  ;;  %p2577_p7 = scmp.lt.s32.totalorder %s2575_s7, %s2568_s10 }
  0x4d   : > { %p2572_p13 = pneg %p2571_p10  ;;  %p2578_p9 = por %p2577_p7, %p2576_p3 }
  0x4f   : > { %p2579_p1 = pnand %p2578_p9, %p2572_p13 }
  0x51   : > { %2582 = shalt.err (!%p2579_p1)
}
  0x52   : > { %2453 = dma.hbm_to_vmem [thread:$0]  (!%p2855_p11), %s2853_s11, 64, %s2859_s18, %s228_s26  }
  0x53   : > { %s2335_s30 = sshll.u32 %s2846_s15, 3  ;;  %s2386_s16 = sshll.u32 %s2687_s24, 7 }
  0x54   : > { %s2893_s20 = scalar_lea.hbm %s3329_s1, %s2386_s16  ;;  %s249_s10 = scalar_lea.vmem [#allocation6], %s2335_s30 }
  0x55   : > { %s257_s8 = sshll.u32 %s249_s10, 4  ;;  %s3350_s7 = sand.u32 1, %s2687_s24   ;;  %s258_s8 = int_to_ptr.vmem [resolvable:$true] %s257_s8 }
  0x56   : > { %s246_s0 = scalar_lea.sflag [#allocation7], %s3350_s7  ;;  %s2583_s2 = scalar_lea.hbm %s2893_s20, 128 }
  0x57   : > { %p2584_p5 = scmp.ne.s32.totalorder %s2893_s20, %s2583_s2  ;;  %s2588_s18 = scalar_lea.hbm %s3329_s1, 256 }
  0x58   : > { %p2589_p6 = scmp.lt.u32.totalorder %s2893_s20, %s3329_s1  ;;  %p2590_p8 = scmp.lt.u32.totalorder %s2588_s18, %s2583_s2 }
  0x59   : > { %p2586_p2 = pnand %p2584_p5, %p2555_p0  ;;  %p2592_p13 = scmp.lt.u32.totalorder %s2583_s2, %s2893_s20 }
  0x5a   : > { %p2591_p10 = por %p2590_p8, %p2589_p6 }
  0x5b   : > { %p2587_p4 = pneg %p2586_p2 }
  0x5c   : > { %p2593_p3 = por %p2592_p13, %p2591_p10 }
  0x5e   : > { %p2594_p7 = pnand %p2593_p3, %p2587_p4 }
  0x60   : > { %2597 = shalt.err (!%p2594_p7)
}
  0x61   : > { %s2598_s30 = scalar_lea.vmem %s258_s8, 128  ;;  %s2693_s17 = smov [#allocation6]  }
  0x62   : > { %p2599_p9 = scmp.ne.s32.totalorder %s258_s8, %s2598_s30  ;;  %s2603_s12 = sshll.u32 %s2693_s17, 4  ;;  %s2604_s12 = int_to_ptr.vmem [resolvable:$false] %s2603_s12 }
  0x63   : > { %s2605_s10 = scalar_lea.vmem %s2604_s12, 256  ;;  %p2606_p2 = scmp.lt.s32.totalorder %s258_s8, %s2604_s12 }
  0x64   : > { %p2601_p1 = pnand %p2599_p9, %p2555_p0  ;;  %p2607_p12 = scmp.lt.s32.totalorder %s2605_s10, %s2598_s30 }
  0x66   : > { %p2602_p5 = pneg %p2601_p1  ;;  %p2608_p6 = por %p2607_p12, %p2606_p2 }
  0x68   : > { %p2609_p8 = pnand %p2608_p6, %p2602_p5 }
  0x6a   : > { %2612 = shalt.err (!%p2609_p8)
}
  0x6b   : > { %2456 = dma.hbm_to_vmem [thread:$0]  (!%p2855_p11), %s2893_s20, 128, %s258_s8, %s246_s0  }
  0x6c   : > { %p3351_p4 = scmp.ne.s32.totalorder %s3343_s29, 0 }
  0x6d   : > { %s2919_s2 = sand.u32 (!%p3351_p4), 1, %s2679_s22   ;;  %p3352_p12 = scmp.ne.s32.totalorder (!%p3351_p4), %s3341_s27, 0 }
  0x6e   : > { %266 = sbr.rel (%p3351_p4) target bundleno = 1862 (0x746), region = 44  ;;  %s2339_s7 = sshll.u32 (!%p3351_p4), %s2919_s2, 2 }
  0x6f   : > { %s269_s15 = scalar_lea.sflag (!%p3351_p4), [#allocation4], %s2919_s2  ;;  %s2923_s11 = scalar_lea.vmem (!%p3351_p4), [#allocation3], %s2339_s7 }
  0x75   : > { %2658 = dma.done.wait (%p3352_p12), %s269_s15, 64  }
  0x76   : > { %2660 = vsyncadd (%p3352_p12), %s269_s15, 4294967232  ;;  %s277_s0 = sand.u32 1, %s2771_s25   ;;  %s2340_s29 = sshll.u32 %s2919_s2, 3 }
  0x77   : > { %s278_s19 = scalar_lea.sflag [#allocation7], %s277_s0  ;;  %s2933_s20 = scalar_lea.vmem [#allocation6], %s2340_s29 }
  0x78   : > { %2662 = dma.done.wait (%p3352_p12), %s278_s19, 128  }
  0x79   : > { %2664 = vsyncadd (%p3352_p12), %s278_s19, 4294967168  ;;  %p3353_p11 = scmp.eq.s32.totalorder %s2771_s25, 0 }
  0x7b   : > { %2666 = dma.done.wait (%p3353_p11), [#allocation7], 2048   ;;  %p3354_p0 = pmov %p3353_p11 }
  0x7c   : > { %v2694_v0 = vmov 0.0   ;;  %v435_v1 = vlaneseq  ;;  %v332_v3 = vld [vmem:[#allocation8 + $0x8] sm:$0xff]  ;;  %v334_v4 = vld [vmem:[#allocation8 + $0x18] sm:$0xff]  ;;  %v331_v5 = vld [vmem:[#allocation8] sm:$0xff]  ;;  %s2695_s16 = smov 113   ;;  %s2696_s30 = smov 111  }
  0x7d   : > { %2668 = vsyncadd (%p3354_p0), [#allocation7], 4294965248  ;;  %415 = vmatprep.mubr.f32.mxu0 %v2694_v0  ;;  %322 = vst [vmem:[#allocation2] sm:$0xff] %v2694_v0  ;;  %539 = vmatprep.mubr.f32.mxu1 %v2694_v0  ;;  %v2388_v6 = vpack.c.bf16 %v334_v4, %v332_v3  ;;  %v333_v7 = vld [vmem:[#allocation8 + $0x10] sm:$0xff]  ;;  %v336_v8 = vld [vmem:[#allocation8 + $0x28] sm:$0xff]  ;;  %vm347_vm0 = vcmask 523264  }
  0x7e   : > { %323 = vst [vmem:[#allocation2 + $0x18] sm:$0xff] %v2694_v0  ;;  %v436_v2 = vshrl.u32 %v435_v1, 7  ;;  %v338_v9 = vld [vmem:[#allocation8 + $0x38] sm:$0xff]  ;;  %v2390_v10 = vpack.c.bf16 %v333_v7, %v331_v5  ;;  %v335_v12 = vld [vmem:[#allocation8 + $0x20] sm:$0xff]  ;;  %v337_v13 = vld [vmem:[#allocation8 + $0x30] sm:$0xff]  ;;  %s2697_s17 = smov 127  }
  0x7f   : > { %v2392_v11 = vpack.c.bf16 %v338_v9, %v336_v8  ;;  %v340_v14 = vld [vmem:[#allocation8 + $0x48] sm:$0xff]  ;;  %2389 = vmatprep.subr.bf16.mxu0 %v2388_v6  ;;  %v342_v16 = vld [vmem:[#allocation8 + $0x58] sm:$0xff]  ;;  %v2394_v17 = vpack.c.bf16 %v337_v13, %v335_v12  ;;  %v339_v20 = vld [vmem:[#allocation8 + $0x40] sm:$0xff]  ;;  %s2698_s12 = smov 1   ;;  %s2699_s10 = smov 15   ;;  %vm447_vm1 = vcmask 908288  }
  0x80   : > { %v437_v15 = vsub.s32 0, %v436_v2  ;;  %2391 = vmatpush1.bf16.msra.mxu0 %v2390_v10  ;;  %v441_v18 = vsub.s32 1, %v436_v2  ;;  %v2396_v19 = vpack.c.bf16 %v342_v16, %v340_v14  ;;  %v341_v21 = vld [vmem:[#allocation8 + $0x50] sm:$0xff]  ;;  %v2343_v22 = vld [vmem:[%s3331_s3 + $0x1] ss:$2 sm:$0x3] }
  0x81   : > { %2393 = vmatprep.subr.bf16.mxu0 %v2392_v11  ;;  %v344_v23 = vld [vmem:[#allocation8 + $0x68] sm:$0xff]  ;;  %v346_v24 = vld [vmem:[#allocation8 + $0x78] sm:$0xff]  ;;  %v2398_v28 = vpack.c.bf16 %v341_v21, %v339_v20  ;;  %v343_v31 = vld [vmem:[#allocation8 + $0x60] sm:$0xff]  ;;  %s2700_s7 = smov 16   ;;  %s2701_s0 = smov 120   ;;  %vm646_vm2 = vcmask 924672  }
  0x82   : > { %v637_v25 = vrot.slane %v2343_v22, %v437_v15  ;;  %v319_v26 = vld [vmem:[%s3331_s3] ss:$2 sm:$0x3]  ;;  %v641_v29 = vrot.slane %v2343_v22, %v441_v18  ;;  %v2400_v30 = vpack.c.bf16 %v346_v24, %v344_v23  ;;  %v345_v32 = vld [vmem:[#allocation8 + $0x70] sm:$0xff]  ;;  %s2702_s19 = smov 17   ;;  %vm749_vm3 = vcmask 1039360  }
  0x83   : > { %v438_v27 = vrot.slane %v319_v26, %v437_v15  ;;  %v442_v33 = vrot.slane %v319_v26, %v441_v18  ;;  %v2402_v34 = vpack.c.bf16 %v345_v32, %v343_v31  ;;  %v330_v35 = vld [vmem:[%s2923_s11] sm:$0xf]  ;;  %v324_v36 = vld [vmem:[%s2933_s20] sm:$0xff]  ;;  %s2703_s20 = smov 112   ;;  %vm768_vm4 = vcmask 7168   ;;  %s2704_s27 = smov 104  }
  0x84   : > { %2395 = vmatpush1.bf16.msra.mxu0 %v2394_v17  ;;  %642 = vrot.lane.b32.xlu1 %v637_v25, %s2695_s16  ;;  %v326_v37 = vcombine.high %v324_v36, %v324_v36  ;;  %328 = vst [vmem:[#allocation2 + $0x8] sm:$0xf] %v324_v36  ;;  %v2971_v38 = vld [vmem:[%s3332_s4] sm:$0xf]  ;;  %s2705_s8 = smov 96   ;;  %vm665_vm5 = vcmask 121856  }
  0x85   : > { %2397 = vmatprep.subr.bf16.mxu0 %v2396_v19  ;;  %443 = vrot.lane.b32.xlu0 %v438_v27, %s2696_s30  ;;  %s2706_s18 = smov 88   ;;  %s2707_s26 = smov 80   ;;  %vm467_vm6 = vcmask 130048   ;;  %vm472_vm7 = vcmask 64512   ;;  %vm555_vm8 = vcmask 138240   ;;  %vm1141_vm9 = vcmask 916480  }
  0x86   : > { %329 = vst [vmem:[#allocation2 + $0x10] sm:$0xf] %v326_v37  ;;  %s2708_s15 = smov 72   ;;  %s2709_s11 = smov 64   ;;  %vm1322_vm10 = vcmask 1043456   ;;  %vm1368_vm11 = vcmask 31744  }
  0x87   : > { %p3355_p13 = scmp.ne.s32.totalorder %s3347_s14, 0 }
  0x88   : > { %2399 = vmatpush1.bf16.msra.mxu0 %v2398_v28  ;;  %644 = vrot.lane.b32.xlu1 %v641_v29, %s2695_s16 }
  0x89   : > { %2401 = vmatprep.subr.bf16.mxu0 %v2400_v30  ;;  %445 = vrot.lane.b32.xlu0 %v442_v33, %s2696_s30 }
  0x8c   : > { %2403 = vmatpush1.bf16.msra.mxu0 %v2402_v34  ;;  %747 = vrot.lane.b32.xlu1 %v442_v33, %s2697_s17 }
  0x8d   : > { %745 = vrot.lane.b32.xlu0 %v438_v27, %s2697_s17 }
  0x8f   : > { %2344 = vmatmul.mubr.msk.f32.vlgmr.msra.gmra.mrb[0].mxu0 %vm347_vm0, %v330_v35 }
  0x90   : > { %930 = vrot.lane.b32.xlu1 %v641_v29, %s2698_s12  ;;  %1620 = vmatprep.mubr.f32.mxu0 %v2694_v0 }
  0x91   : > { %928 = vrot.lane.b32.xlu0 %v637_v25, %s2698_s12 }
  0x94   : > { %1031 = vrot.lane.b32.xlu1 %v442_v33, %s2699_s10 }
  0x95   : > { %1029 = vrot.lane.b32.xlu0 %v438_v27, %s2699_s10 }
  0x98   : > { %456 = vrot.lane.b32.xlu1 %v2971_v38, %s2701_s0 }
  0x99   : > { %461 = vrot.lane.b32.xlu0 %v2694_v0, %s2700_s7 }
  0xf6   : > { %v2983_v46 = vpop.permute.xlu1 %642 }
  0xf7   : > { %v2975_v43 = vpop.permute.xlu0 %443  ;;  %v651_v55 = vmul.f32 0.0, %v2983_v46 }
  0xf8   : > { %v452_v52 = vmul.f32 0.0, %v2975_v43 }
  0xfa   : > { %v2998_v50 = vpop.permute.xlu1 %644 }
  0xfb   : > { %v2987_v47 = vpop.permute.xlu0 %445  ;;  %v3006_v53 = vsel %vm646_vm2, %v2983_v46, %v2998_v50 }
  0xfc   : > { %v2992_v48 = vsel %vm447_vm1, %v2975_v43, %v2987_v47 }
  0xfe   : > { %v3017_v57 = vpop.permute.xlu1 %747 }
  0xff   : > { %v3019_v58 = vpop.permute.xlu0 %745 }
 0x100   : > { %v3024_v59 = vsel %vm749_vm3, %v3019_v58, %v3017_v57  ;;  %v754_v61 = vmul.f32 0.0, %v3019_v58 }
 0x102   : > { %v3038_v63 = vpop.permute.xlu1 %930 }
 0x103   : > { %v3040_v1 = vpop.permute.xlu0 %928  ;;  %v938_v3 = vmul.f32 0.0, %v3038_v63 }
 0x104   : > { %v3045_v2 = vsel %vm768_vm4, %v3040_v1, %v3038_v63 }
 0x106   : > { %v3054_v5 = vpop.permute.xlu1 %1031 }
 0x107   : > { %v3056_v6 = vpop.permute.xlu0 %1029  ;;  %v1039_v9 = vmul.f32 0.0, %v3054_v5 }
 0x108   : > { %v3065_v8 = vsel %vm665_vm5, %v3056_v6, %v3054_v5 }
 0x10a   : > { %v457_v13 = vpop.permute.xlu1 %456 }
 0x10b   : > { %v462_v12 = vpop.permute.xlu0 %461 }
 0x162   : > { %v417_v39 = vpop.f32.mrb[0].mxu0 }
 0x163   : > { %v424_v40 = vrot.slane %v417_v39, 4  ;;  %v419_v41 = vpop.f32.mrb[1].mxu0 }
 0x164   : > { %v425_v42 = vrot.slane %v419_v41, 4 }
 0x165   : > { %428 = vst [vmem:[#allocation2 + $0x8] sm:$0xf0] %v424_v40 }
 0x166   : > { %429 = vst [vmem:[#allocation2 + $0x10] sm:$0xf0] %v425_v42 }
 0x16c   : > { %v2977_v44 = vld [vmem:[#allocation2 + $0x8] sm:$0xff] }
 0x16d   : > { %v2979_v45 = vld [vmem:[#allocation2 + $0x10] sm:$0xff]  ;;  %463 = vrot.lane.b32.xlu0 %v2977_v44, %s2700_s7  ;;  %v453_v49 = vmul.f32 %v2977_v44, %v2992_v48  ;;  %v652_v54 = vmul.f32 %v2977_v44, %v3006_v53  ;;  %v755_v60 = vmul.f32 %v2977_v44, %v3024_v59  ;;  %v936_v7 = vmul.f32 %v3040_v1, %v2977_v44 }
 0x16e   : > { %465 = vrot.lane.b32.xlu1 %v2979_v45, %s2700_s7  ;;  %v454_v51 = vmul.f32 %v2987_v47, %v2979_v45  ;;  %v653_v56 = vmul.f32 %v2998_v50, %v2979_v45  ;;  %v756_v62 = vmul.f32 %v3017_v57, %v2979_v45  ;;  %v937_v4 = vmul.f32 %v3045_v2, %v2979_v45 }
 0x16f   : > { %v1038_v10 = vmul.f32 %v3065_v8, %v2979_v45  ;;  %v1037_v11 = vmul.f32 %v3056_v6, %v2977_v44 }
 0x171   : > { %1221 = vrot.lane.b32.xlu0 %v637_v25, %s2702_s19 }
 0x172   : > { %1223 = vrot.lane.b32.xlu1 %v641_v29, %s2702_s19 }
 0x175   : > { %551 = vrot.lane.b32.xlu0 %v453_v49, %s2702_s19 }
 0x176   : > { %553 = vrot.lane.b32.xlu1 %v454_v51, %s2702_s19 }
 0x179   : > { %549 = vrot.lane.b32.xlu0 %v452_v52, %s2702_s19 }
 0x17a   : > { %661 = vrot.lane.b32.xlu1 %v652_v54, %s2699_s10 }
 0x17d   : > { %663 = vrot.lane.b32.xlu0 %v653_v56, %s2699_s10 }
 0x17e   : > { %659 = vrot.lane.b32.xlu1 %v651_v55, %s2699_s10 }
 0x181   : > { %654 = vrot.lane.b32.xlu0 %v2971_v38, %s2703_s20 }
 0x182   : > { %764 = vrot.lane.b32.xlu1 %v755_v60, %s2698_s12 }
 0x185   : > { %766 = vrot.lane.b32.xlu0 %v756_v62, %s2698_s12 }
 0x186   : > { %762 = vrot.lane.b32.xlu1 %v754_v61, %s2698_s12 }
 0x189   : > { %757 = vrot.lane.b32.xlu0 %v2971_v38, %s2704_s27 }
 0x18a   : > { %848 = vrot.lane.b32.xlu1 %v2971_v38, %s2705_s8 }
 0x18d   : > { %946 = vrot.lane.b32.xlu0 %v937_v4, %s2697_s17 }
 0x18e   : > { %948 = vrot.lane.b32.xlu1 %v938_v3, %s2697_s17 }
 0x191   : > { %944 = vrot.lane.b32.xlu0 %v936_v7, %s2697_s17 }
 0x192   : > { %939 = vrot.lane.b32.xlu1 %v2971_v38, %s2706_s18 }
 0x195   : > { %1047 = vrot.lane.b32.xlu0 %v1038_v10, %s2695_s16 }
 0x196   : > { %1049 = vrot.lane.b32.xlu1 %v1039_v9, %s2695_s16 }
 0x199   : > { %1045 = vrot.lane.b32.xlu0 %v1037_v11, %s2695_s16 }
 0x19a   : > { %1040 = vrot.lane.b32.xlu1 %v2971_v38, %s2707_s26 }
 0x19d   : > { %1137 = vrot.lane.b32.xlu0 %v2979_v45, %s2703_s20 }
 0x19e   : > { %1139 = vrot.lane.b32.xlu1 %v2694_v0, %s2703_s20 }
 0x1a1   : > { %1135 = vrot.lane.b32.xlu0 %v2977_v44, %s2703_s20 }
 0x1a2   : > { %1130 = vrot.lane.b32.xlu1 %v2971_v38, %s2708_s15  ;;  %s2710_s15 = smov 116  }
 0x1df   : > { %v464_v14 = vpop.permute.xlu0 %463 }
 0x1e0   : > { %v466_v15 = vpop.permute.xlu1 %465  ;;  %v468_v17 = vsel %vm467_vm6, %v462_v12, %v464_v14 }
 0x1e1   : > { %v469_v16 = vsel %vm467_vm6, %v464_v14, %v466_v15 }
 0x1e2   : > { %475 = vmatprep.subr.mxu1 %v469_v16 }
 0x1e3   : > { %476 = vmatpush1.msra.mxu1 %v468_v17  ;;  %v3087_v18 = vpop.permute.xlu0 %1221 }
 0x1e4   : > { %v3089_v19 = vpop.permute.xlu1 %1223  ;;  %2345 = vmatmul.mubr.msk.f32.vlgmr.msra.gmra.mrb[0].mxu1 %vm472_vm7, %v457_v13  ;;  %v1229_v26 = vmul.f32 %v3087_v18, %v2977_v44 }
 0x1e5   : > { %v3095_v20 = vsel %vm555_vm8, %v3087_v18, %v3089_v19  ;;  %v1231_v21 = vmul.f32 0.0, %v3089_v19  ;;  %626 = vmatprep.mubr.f32.mxu1 %v2694_v0 }
 0x1e6   : > { %v1230_v22 = vmul.f32 %v3095_v20, %v2979_v45 }
 0x1e7   : > { %1241 = vrot.lane.b32.xlu1 %v1231_v21, %s2696_s30  ;;  %v552_v23 = vpop.permute.xlu0 %551 }
 0x1e8   : > { %v554_v24 = vpop.permute.xlu1 %553  ;;  %1239 = vrot.lane.b32.xlu0 %v1230_v22, %s2696_s30 }
 0x1e9   : > { %v557_v25 = vsel %vm555_vm8, %v552_v23, %v554_v24 }
 0x1ea   : > { %562 = vmatprep.subr.mxu1 %v557_v25 }
 0x1eb   : > { %v550_v27 = vpop.permute.xlu0 %549  ;;  %1232 = vrot.lane.b32.xlu1 %v2971_v38, %s2709_s11 }
 0x1ec   : > { %v556_v28 = vsel %vm555_vm8, %v550_v27, %v552_v23  ;;  %v662_v29 = vpop.permute.xlu1 %661  ;;  %1237 = vrot.lane.b32.xlu0 %v1229_v26, %s2696_s30  ;;  %v3142_v26 = vld [vmem:[#allocation2] sm:$0xf] }
 0x1ed   : > { %563 = vmatpush1.msra.mxu1 %v556_v28  ;;  %v1534_v27 = vmul.f32 %v3142_v26, %v2983_v46  ;;  %v1629_v28 = vmul.f32 %v3142_v26, %v3019_v58  ;;  %v3155_v46 = vld [vmem:[%s3333_s5] sm:$0xf] }
 0x1ee   : > { %2346 = vmatmul.mubr.msk.f32.vlgmr.msra.gmra.mrb[0].mxu1 %vm472_vm7, %v2971_v38 }
 0x1ef   : > { %v664_v30 = vpop.permute.xlu0 %663  ;;  %736 = vmatprep.mubr.f32.mxu1 %v2694_v0 }
 0x1f0   : > { %v660_v31 = vpop.permute.xlu1 %659  ;;  %v667_v32 = vsel %vm665_vm5, %v662_v29, %v664_v30 }
 0x1f1   : > { %v666_v33 = vsel %vm665_vm5, %v660_v31, %v662_v29  ;;  %672 = vmatprep.subr.mxu1 %v667_v32 }
 0x1f2   : > { %673 = vmatpush1.msra.mxu1 %v666_v33 }
 0x1f3   : > { %v655_v34 = vpop.permute.xlu0 %654 }
 0x1f4   : > { %v765_v35 = vpop.permute.xlu1 %764 }
 0x1f6   : > { %2347 = vmatmul.mubr.msk.f32.vlgmr.msra.gmra.mrb[0].mxu1 %vm472_vm7, %v655_v34 }
 0x1f7   : > { %v767_v36 = vpop.permute.xlu0 %766  ;;  %839 = vmatprep.mubr.f32.mxu1 %v2694_v0 }
 0x1f8   : > { %v763_v37 = vpop.permute.xlu1 %762  ;;  %v770_v38 = vsel %vm768_vm4, %v765_v35, %v767_v36 }
 0x1f9   : > { %v769_v39 = vsel %vm768_vm4, %v763_v37, %v765_v35  ;;  %775 = vmatprep.subr.mxu1 %v770_v38 }
 0x1fa   : > { %776 = vmatpush1.msra.mxu1 %v769_v39 }
 0x1fb   : > { %852 = vmatprep.subr.mxu1 %v2979_v45  ;;  %v758_v40 = vpop.permute.xlu0 %757 }
 0x1fc   : > { %v849_v41 = vpop.permute.xlu1 %848 }
 0x1fe   : > { %2348 = vmatmul.mubr.msk.f32.vlgmr.msra.gmra.mrb[0].mxu1 %vm472_vm7, %v758_v40 }
 0x1ff   : > { %853 = vmatpush1.msra.mxu1 %v2977_v44  ;;  %v947_v42 = vpop.permute.xlu0 %946  ;;  %916 = vmatprep.mubr.f32.mxu1 %v2694_v0 }
 0x200   : > { %v949_v49 = vpop.permute.xlu1 %948 }
 0x201   : > { %v951_v51 = vsel %vm749_vm3, %v947_v42, %v949_v49 }
 0x202   : > { %956 = vmatprep.subr.mxu1 %v951_v51 }
 0x203   : > { %v945_v52 = vpop.permute.xlu0 %944 }
 0x204   : > { %v950_v54 = vsel %vm749_vm3, %v945_v52, %v947_v42  ;;  %v940_v55 = vpop.permute.xlu1 %939 }
 0x206   : > { %2349 = vmatmul.mubr.msk.f32.vlgmr.msra.gmra.mrb[0].mxu1 %vm472_vm7, %v849_v41 }
 0x207   : > { %957 = vmatpush1.msra.mxu1 %v950_v54  ;;  %v1048_v45 = vpop.permute.xlu0 %1047  ;;  %1020 = vmatprep.mubr.f32.mxu1 %v2694_v0 }
 0x208   : > { %v1050_v56 = vpop.permute.xlu1 %1049 }
 0x209   : > { %v1052_v44 = vsel %vm646_vm2, %v1048_v45, %v1050_v56 }
 0x20a   : > { %1057 = vmatprep.subr.mxu1 %v1052_v44 }
 0x20b   : > { %v1046_v60 = vpop.permute.xlu0 %1045 }
 0x20c   : > { %v1051_v61 = vsel %vm646_vm2, %v1046_v60, %v1048_v45  ;;  %v1041_v62 = vpop.permute.xlu1 %1040 }
 0x20e   : > { %2350 = vmatmul.mubr.msk.f32.vlgmr.msra.gmra.mrb[0].mxu1 %vm472_vm7, %v940_v55 }
 0x20f   : > { %1058 = vmatpush1.msra.mxu1 %v1051_v61  ;;  %v1138_v3 = vpop.permute.xlu0 %1137  ;;  %1121 = vmatprep.mubr.f32.mxu1 %v2694_v0 }
 0x210   : > { %v1140_v4 = vpop.permute.xlu1 %1139 }
 0x211   : > { %v1143_v7 = vsel %vm1141_vm9, %v1138_v3, %v1140_v4 }
 0x212   : > { %1148 = vmatprep.subr.mxu1 %v1143_v7 }
 0x213   : > { %v1136_v9 = vpop.permute.xlu0 %1135 }
 0x214   : > { %v1142_v10 = vsel %vm1141_vm9, %v1136_v9, %v1138_v3  ;;  %v1131_v11 = vpop.permute.xlu1 %1130 }
 0x216   : > { %2351 = vmatmul.mubr.msk.f32.vlgmr.msra.gmra.mrb[0].mxu1 %vm472_vm7, %v1041_v62 }
 0x217   : > { %1149 = vmatpush1.msra.mxu1 %v1142_v10  ;;  %1212 = vmatprep.mubr.f32.mxu1 %v2694_v0 }
 0x21e   : > { %2352 = vmatmul.mubr.msk.f32.vlgmr.msra.gmra.mrb[0].mxu1 %vm472_vm7, %v1131_v11 }
 0x21f   : > { %1313 = vmatprep.mubr.f32.mxu1 %v2694_v0 }
 0x259   : > { %v1242_v12 = vpop.permute.xlu1 %1241 }
 0x25a   : > { %v1240_v13 = vpop.permute.xlu0 %1239 }
 0x25b   : > { %v1244_v14 = vsel %vm447_vm1, %v1240_v13, %v1242_v12 }
 0x25c   : > { %1249 = vmatprep.subr.mxu1 %v1244_v14 }
 0x25d   : > { %v1233_v16 = vpop.permute.xlu1 %1232 }
 0x25e   : > { %v1238_v15 = vpop.permute.xlu0 %1237 }
 0x25f   : > { %v1243_v17 = vsel %vm447_vm1, %v1238_v15, %v1240_v13 }
 0x260   : > { %1250 = vmatpush1.msra.mxu1 %v1243_v17 }
 0x261   : > { %2353 = vmatmul.mubr.msk.f32.vlgmr.msra.gmra.mrb[0].mxu1 %vm472_vm7, %v1233_v16 }
 0x262   : > { %1439 = vmatprep.mubr.f32.mxu1 %v2694_v0 }
 0x334   : > { %v1315_v21 = vpop.f32.mrb[0].mxu1 }
 0x335   : > { %v1323_v22 = vsel %vm1322_vm10, %v1315_v21, 0.0  ;;  %v1317_v23 = vpop.f32.mrb[1].mxu1 }
 0x336   : > { %v1324_v24 = vsel %vm1322_vm10, %v1317_v23, 0.0 }
 0x337   : > { %v1325_v25 = vadd.f32 %v1324_v24, %v1323_v22 }
 0x339   : > { %1326 = vadd.xlane.f32.xlu0 %v1325_v25 }
 0x34f   : > { %1542 = vrot.lane.b32.xlu0 %v1534_v27, %s2699_s10 }
 0x353   : > { %1637 = vrot.lane.b32.xlu0 %v1629_v28, %s2698_s12 }
 0x3c6   : > { %v1327_v29 = vpop.xlane.xlu0 %1326 }
 0x3c7   : > { %v1328_v30 = vmul.f32 0.00390625, %v1327_v29 }
 0x3c9   : > { %v1329_v31 = vsub.f32 %v1315_v21, %v1328_v30  ;;  %v1330_v32 = vsub.f32 %v1317_v23, %v1328_v30 }
 0x3cb   : > { %v1331_v33 = vmul.f32 %v1329_v31, %v1329_v31  ;;  %v1332_v34 = vmul.f32 %v1330_v32, %v1330_v32 }
 0x3cd   : > { %v1333_v35 = vsel %vm1322_vm10, %v1331_v33, 0.0  ;;  %v1334_v36 = vsel %vm1322_vm10, %v1332_v34, 0.0 }
 0x3ce   : > { %v1335_v37 = vadd.f32 %v1334_v36, %v1333_v35 }
 0x3d0   : > { %1336 = vadd.xlane.f32.xlu1 %v1335_v37 }
 0x3e1   : > { %1537 = vrot.lane.b32.xlu1 %v3155_v46, %s2701_s0 }
 0x3e5   : > { %1632 = vrot.lane.b32.xlu1 %v3155_v46, %s2710_s15 }
 0x45d   : > { %v1337_v58 = vpop.xlane.xlu1 %1336 }
 0x45e   : > { %v1338_v38 = vmul.f32 0.00390625, %v1337_v58 }
 0x460   : > { %v1339_v39 = vadd.f32 1e-05, %v1338_v38 }
 0x462   : > { %2521 = vrsqrt.f32 %v1339_v39 }
 0x46c   : > { %v2522_v40 = vpop.eup %2521 }
 0x46d   : > { %v1341_v41 = vmul.f32 %v2522_v40, %v1329_v31  ;;  %v1342_v42 = vmul.f32 %v2522_v40, %v1330_v32 }
 0x46f   : > { %v1343_v49 = vmax.f32 %v1341_v41, 0.0  ;;  %v1344_v51 = vmax.f32 %v1342_v42, 0.0 }
 0x471   : > { %1345 = vst [vmem:[#allocation2 + $0x8] sm:$0xf] %v1343_v49  ;;  %1346 = vst [vmem:[#allocation2 + $0x10] sm:$0xf] %v1344_v51 }
 0x478   : > { %v3160_v52 = vld [vmem:[#allocation2 + $0x10] sm:$0xf]  ;;  %v3162_v54 = vld [vmem:[#allocation2 + $0x8] sm:$0xf] }
 0x479   : > { %v1536_v55 = vmul.f32 %v3160_v52, %v2998_v50  ;;  %v1535_v45 = vmul.f32 %v3162_v54, %v3006_v53  ;;  %v1631_v56 = vmul.f32 %v3160_v52, %v3017_v57  ;;  %v1630_v44 = vmul.f32 %v3162_v54, %v3024_v59  ;;  %v1807_v50 = vld [vmem:[#allocation2 + $0x18] sm:$0xf]  ;;  %v1806_v60 = vld [vmem:[#allocation2 + $0x10] sm:$0xf]  ;;  %v1805_v61 = vld [vmem:[#allocation2 + $0x8] sm:$0xf] }
 0x47a   : > { %v1810_v53 = vmul.f32 %v1807_v50, %v3038_v63  ;;  %v1905_v57 = vmul.f32 %v1807_v50, %v3054_v5  ;;  %v1809_v59 = vmul.f32 %v1806_v60, %v3045_v2  ;;  %v1808_v63 = vmul.f32 %v1805_v61, %v3040_v1 }
 0x47b   : > { %1546 = vrot.lane.b32.xlu1 %v1536_v55, %s2699_s10  ;;  %1544 = vrot.lane.b32.xlu0 %v1535_v45, %s2699_s10  ;;  %s2711_s10 = smov 108   ;;  %v1904_v62 = vmul.f32 %v1806_v60, %v3065_v8  ;;  %v1903_v2 = vmul.f32 %v1805_v61, %v3056_v6  ;;  %v1351_v1 = vmul.f32 %v3142_v26, %v2975_v43 }
 0x47c   : > { %v2092_v5 = vmul.f32 %v1807_v50, %v3089_v19  ;;  %v1352_v6 = vmul.f32 %v3162_v54, %v2992_v48  ;;  %v1353_v8 = vmul.f32 %v3160_v52, %v2987_v47  ;;  %v2091_v3 = vmul.f32 %v1806_v60, %v3095_v20  ;;  %v1538_v48 = vpop.permute.xlu1 %1537  ;;  %v1543_v19 = vpop.permute.xlu0 %1542 }
 0x47d   : > { %v2090_v43 = vmul.f32 %v1805_v61, %v3087_v18 }
 0x47f   : > { %1362 = vrot.lane.b32.xlu1 %v3162_v54, %s2700_s7  ;;  %1724 = vrot.lane.b32.xlu0 %v3155_v46, %s2703_s20 }
 0x480   : > { %v1633_v4 = vpop.permute.xlu1 %1632  ;;  %v1638_v7 = vpop.permute.xlu0 %1637 }
 0x483   : > { %1641 = vrot.lane.b32.xlu1 %v1631_v56, %s2698_s12  ;;  %1639 = vrot.lane.b32.xlu0 %v1630_v44, %s2698_s12  ;;  %s2712_s12 = smov 124  }
 0x487   : > { %2005 = vrot.lane.b32.xlu1 %v1806_v60, %s2703_s20  ;;  %1820 = vrot.lane.b32.xlu0 %v1810_v53, %s2697_s17 }
 0x48b   : > { %1360 = vrot.lane.b32.xlu1 %v3142_v26, %s2700_s7  ;;  %1811 = vrot.lane.b32.xlu0 %v3155_v46, %s2711_s10 }
 0x48f   : > { %1818 = vrot.lane.b32.xlu1 %v1809_v59, %s2697_s17  ;;  %1915 = vrot.lane.b32.xlu0 %v1905_v57, %s2695_s16 }
 0x493   : > { %1816 = vrot.lane.b32.xlu1 %v1808_v63, %s2697_s17  ;;  %1906 = vrot.lane.b32.xlu0 %v3155_v46, %s2704_s27  ;;  %s2713_s17 = smov 100   ;;  %s2213_s27 = scalar_lea.sflag [#allocation5], %s2919_s2 }
 0x497   : > { %1913 = vrot.lane.b32.xlu1 %v1904_v62, %s2695_s16  ;;  %1364 = vrot.lane.b32.xlu0 %v3160_v52, %s2700_s7 }
 0x49b   : > { %1911 = vrot.lane.b32.xlu1 %v1903_v2, %s2695_s16  ;;  %2007 = vrot.lane.b32.xlu0 %v1807_v50, %s2703_s20  ;;  %s2387_s16 = sshll.u32 %s2771_s25, 7  ;;  %s2714_s25 = smov [#allocation9]  }
 0x49f   : > { %1355 = vrot.lane.b32.xlu1 %v3155_v46, %s2712_s12  ;;  %2003 = vrot.lane.b32.xlu0 %v1805_v61, %s2703_s20  ;;  %s3284_s20 = scalar_lea.hbm %s3334_s6, %s2387_s16 }
 0x4a3   : > { %1449 = vrot.lane.b32.xlu1 %v1351_v1, %s2702_s19  ;;  %1998 = vrot.lane.b32.xlu0 %v3155_v46, %s2713_s17 }
 0x4a7   : > { %2102 = vrot.lane.b32.xlu0 %v2092_v5, %s2696_s30  ;;  %1451 = vrot.lane.b32.xlu1 %v1352_v6, %s2702_s19 }
 0x4ab   : > { %1453 = vrot.lane.b32.xlu0 %v1353_v8, %s2702_s19  ;;  %2100 = vrot.lane.b32.xlu1 %v2091_v3, %s2696_s30 }
 0x4af   : > { %2098 = vrot.lane.b32.xlu0 %v2090_v43, %s2696_s30  ;;  %2093 = vrot.lane.b32.xlu1 %v3155_v46, %s2705_s8  ;;  %s318_s30 = scalar_lea.vmem [#allocation9], %s2340_s29  ;;  %s2617_s29 = sshll.u32 %s2714_s25, 4  ;;  %s2618_s29 = int_to_ptr.vmem [resolvable:$false] %s2617_s29 }
 0x4b0   : > { %s2227_s7 = sshll.u32 %s318_s30, 4  ;;  %s2619_s11 = scalar_lea.vmem %s2618_s29, 256  ;;  %s3286_s7 = int_to_ptr.vmem [resolvable:$true] %s2227_s7 }
 0x4b1   : > { %s2613_s8 = scalar_lea.vmem %s3286_s7, 128  ;;  %p2620_p9 = scmp.lt.s32.totalorder %s3286_s7, %s2618_s29 }
 0x4b2   : > { %p2614_p10 = scmp.ne.s32.totalorder %s3286_s7, %s2613_s8  ;;  %p2621_p1 = scmp.lt.s32.totalorder %s2619_s11, %s2613_s8 }
 0x4b4   : > { %p2615_p3 = pnand %p2614_p10, %p3355_p13  ;;  %p2622_p5 = por %p2621_p1, %p2620_p9 }
 0x4b6   : > { %p2616_p7 = pneg %p2615_p3 }
 0x4b8   : > { %p2623_p2 = pnand %p2622_p5, %p2616_p7 }
 0x4ed   : > { %v1547_v9 = vpop.permute.xlu1 %1546  ;;  %v1545_v10 = vpop.permute.xlu0 %1544 }
 0x4ee   : > { %v1548_v47 = vsel %vm665_vm5, %v1543_v19, %v1545_v10  ;;  %v1549_v20 = vsel %vm665_vm5, %v1545_v10, %v1547_v9 }
 0x4ef   : > { %2360 = vmatprep.subr.msk.mxu0 %vm1322_vm10, %v1549_v20 }
 0x4f0   : > { %2361 = vmatpush1.msk.msra.mxu0 %vm1322_vm10, %v1548_v47 }
 0x4f1   : > { %v1363_v18 = vpop.permute.xlu1 %1362  ;;  %2362 = vmatmul.mubr.msk.f32.vlgmr.msra.gmra.mrb[2].mxu0 %vm1368_vm11, %v1538_v48  ;;  %v1725_v11 = vpop.permute.xlu0 %1724 }
 0x4f2   : > { %1715 = vmatprep.mubr.f32.mxu0 %v2694_v0 }
 0x4f5   : > { %v1642_v12 = vpop.permute.xlu1 %1641  ;;  %v1640_v13 = vpop.permute.xlu0 %1639 }
 0x4f6   : > { %v1643_v14 = vsel %vm768_vm4, %v1638_v7, %v1640_v13  ;;  %v1644_v15 = vsel %vm768_vm4, %v1640_v13, %v1642_v12 }
 0x4f7   : > { %2363 = vmatprep.subr.msk.mxu0 %vm1322_vm10, %v1644_v15 }
 0x4f8   : > { %2364 = vmatpush1.msk.msra.mxu0 %vm1322_vm10, %v1643_v14 }
 0x4f9   : > { %v2006_v16 = vpop.permute.xlu1 %2005  ;;  %2365 = vmatmul.mubr.msk.f32.vlgmr.msra.gmra.mrb[2].mxu0 %vm1368_vm11, %v1633_v4  ;;  %2366 = vmatprep.subr.msk.mxu0 %vm1322_vm10, %v3160_v52  ;;  %v1821_v17 = vpop.permute.xlu0 %1820 }
 0x4fa   : > { %2367 = vmatpush1.msk.msra.mxu0 %vm1322_vm10, %v3162_v54  ;;  %1796 = vmatprep.mubr.f32.mxu0 %v2694_v0 }
 0x4fd   : > { %v1361_v21 = vpop.permute.xlu1 %1360  ;;  %v1812_v22 = vpop.permute.xlu0 %1811 }
 0x4fe   : > { %v1366_v33 = vsel %vm467_vm6, %v1361_v21, %v1363_v18 }
 0x501   : > { %v1819_v23 = vpop.permute.xlu1 %1818  ;;  %2368 = vmatmul.mubr.msk.f32.vlgmr.msra.gmra.mrb[2].mxu0 %vm1368_vm11, %v1725_v11  ;;  %v1916_v24 = vpop.permute.xlu0 %1915 }
 0x502   : > { %v1823_v25 = vsel %vm749_vm3, %v1819_v23, %v1821_v17  ;;  %1894 = vmatprep.mubr.f32.mxu0 %v2694_v0 }
 0x503   : > { %2369 = vmatprep.subr.msk.mxu0 %vm1322_vm10, %v1823_v25 }
 0x505   : > { %v1817_v26 = vpop.permute.xlu1 %1816  ;;  %v1907_v27 = vpop.permute.xlu0 %1906 }
 0x506   : > { %v1822_v28 = vsel %vm749_vm3, %v1817_v26, %v1819_v23 }
 0x507   : > { %2370 = vmatpush1.msk.msra.mxu0 %vm1322_vm10, %v1822_v28 }
 0x509   : > { %v1914_v29 = vpop.permute.xlu1 %1913  ;;  %2371 = vmatmul.mubr.msk.f32.vlgmr.msra.gmra.mrb[2].mxu0 %vm1368_vm11, %v1812_v22  ;;  %v1365_v30 = vpop.permute.xlu0 %1364 }
 0x50a   : > { %v1918_v31 = vsel %vm646_vm2, %v1914_v29, %v1916_v24  ;;  %v1367_v32 = vsel %vm467_vm6, %v1363_v18, %v1365_v30  ;;  %1989 = vmatprep.mubr.f32.mxu0 %v2694_v0 }
 0x50b   : > { %2354 = vmatprep.subr.msk.mxu1 %vm1322_vm10, %v1367_v32  ;;  %2372 = vmatprep.subr.msk.mxu0 %vm1322_vm10, %v1918_v31 }
 0x50c   : > { %2355 = vmatpush1.msk.msra.mxu1 %vm1322_vm10, %v1366_v33 }
 0x50d   : > { %v1912_v34 = vpop.permute.xlu1 %1911  ;;  %v2008_v35 = vpop.permute.xlu0 %2007 }
 0x50e   : > { %v1917_v36 = vsel %vm646_vm2, %v1912_v34, %v1914_v29  ;;  %v2010_v37 = vsel %vm1141_vm9, %v2006_v16, %v2008_v35 }
 0x50f   : > { %2373 = vmatpush1.msk.msra.mxu0 %vm1322_vm10, %v1917_v36 }
 0x510   : > { %2375 = vmatprep.subr.msk.mxu0 %vm1322_vm10, %v2010_v37 }
 0x511   : > { %v1356_v58 = vpop.permute.xlu1 %1355  ;;  %2374 = vmatmul.mubr.msk.f32.vlgmr.msra.gmra.mrb[2].mxu0 %vm1368_vm11, %v1907_v27  ;;  %v2004_v38 = vpop.permute.xlu0 %2003 }
 0x512   : > { %v2009_v39 = vsel %vm1141_vm9, %v2004_v38, %v2006_v16  ;;  %2356 = vmatmul.mubr.msk.f32.vlgmr.msra.gmra.mrb[2].mxu1 %vm1368_vm11, %v1356_v58  ;;  %2081 = vmatprep.mubr.f32.mxu0 %v2694_v0 }
 0x513   : > { %2376 = vmatpush1.msk.msra.mxu0 %vm1322_vm10, %v2009_v39  ;;  %1527 = vmatprep.mubr.f32.mxu1 %v2694_v0 }
 0x515   : > { %v1450_v40 = vpop.permute.xlu1 %1449  ;;  %v1999_v41 = vpop.permute.xlu0 %1998 }
 0x519   : > { %v1452_v42 = vpop.permute.xlu1 %1451  ;;  %2377 = vmatmul.mubr.msk.f32.vlgmr.msra.gmra.mrb[2].mxu0 %vm1368_vm11, %v1999_v41  ;;  %v2103_v49 = vpop.permute.xlu0 %2102 }
 0x51a   : > { %2176 = vmatprep.mubr.f32.mxu0 %v2694_v0  ;;  %v1455_v45 = vsel %vm555_vm8, %v1450_v40, %v1452_v42 }
 0x51d   : > { %v2101_v51 = vpop.permute.xlu1 %2100  ;;  %v1454_v52 = vpop.permute.xlu0 %1453 }
 0x51e   : > { %v2105_v54 = vsel %vm447_vm1, %v2101_v51, %v2103_v49  ;;  %v1456_v55 = vsel %vm555_vm8, %v1452_v42, %v1454_v52 }
 0x51f   : > { %2357 = vmatprep.subr.msk.mxu1 %vm1322_vm10, %v1456_v55  ;;  %2378 = vmatprep.subr.msk.mxu0 %vm1322_vm10, %v2105_v54 }
 0x520   : > { %2358 = vmatpush1.msk.msra.mxu1 %vm1322_vm10, %v1455_v45 }
 0x521   : > { %2359 = vmatmul.mubr.msk.f32.vlgmr.msra.gmra.mrb[2].mxu1 %vm1368_vm11, %v3155_v46  ;;  %v2099_v56 = vpop.permute.xlu0 %2098  ;;  %v2094_v44 = vpop.permute.xlu1 %2093 }
 0x522   : > { %v2104_v0 = vsel %vm447_vm1, %v2099_v56, %v2101_v51 }
 0x523   : > { %2379 = vmatpush1.msk.msra.mxu0 %vm1322_vm10, %v2104_v0 }
 0x524   : > { %2380 = vmatmul.mubr.msk.f32.vlgmr.msra.gmra.mrb[2].mxu0 %vm1368_vm11, %v2094_v44 }
 0x5f4   : > { %v1529_v50 = vpop.f32.mrb[2].mxu1 }
 0x5f5   : > { %v1531_v53 = vpop.f32.mrb[3].mxu1 }
 0x5f7   : > { %v2178_v60 = vpop.f32.mrb[2].mxu0 }
 0x5f8   : > { %v2404_v57 = vadd.f32 %v2178_v60, %v1529_v50  ;;  %v2180_v59 = vpop.f32.mrb[3].mxu0 }
 0x5f9   : > { %v2405_v61 = vadd.f32 %v2180_v59, %v1531_v53 }
 0x5fa   : > { %v2185_v63 = vsel %vm1322_vm10, %v2404_v57, 0.0 }
 0x5fb   : > { %v2186_v62 = vsel %vm1322_vm10, %v2405_v61, 0.0 }
 0x5fc   : > { %v2187_v2 = vadd.f32 %v2186_v62, %v2185_v63 }
 0x5fe   : > { %2188 = vadd.xlane.f32.xlu0 %v2187_v2 }
 0x68b   : > { %v2189_v46 = vpop.xlane.xlu0 %2188 }
 0x68c   : > { %v2190_v1 = vmul.f32 0.00390625, %v2189_v46 }
 0x68e   : > { %v2191_v5 = vsub.f32 %v2404_v57, %v2190_v1  ;;  %v2192_v6 = vsub.f32 %v2405_v61, %v2190_v1 }
 0x690   : > { %v2193_v8 = vmul.f32 %v2191_v5, %v2191_v5  ;;  %v2194_v3 = vmul.f32 %v2192_v6, %v2192_v6 }
 0x692   : > { %v2195_v43 = vsel %vm1322_vm10, %v2193_v8, 0.0  ;;  %v2196_v48 = vsel %vm1322_vm10, %v2194_v3, 0.0 }
 0x693   : > { %v2197_v19 = vadd.f32 %v2196_v48, %v2195_v43 }
 0x695   : > { %2198 = vadd.xlane.f32.xlu1 %v2197_v19 }
 0x722   : > { %v2199_v4 = vpop.xlane.xlu1 %2198 }
 0x723   : > { %v2200_v7 = vmul.f32 0.00390625, %v2199_v4 }
 0x725   : > { %v2201_v9 = vadd.f32 1e-05, %v2200_v7 }
 0x727   : > { %2523 = vrsqrt.f32 %v2201_v9 }
 0x731   : > { %v2524_v10 = vpop.eup %2523 }
 0x732   : > { %v2203_v47 = vmul.f32 %v2524_v10, %v2191_v5  ;;  %v2204_v20 = vmul.f32 %v2524_v10, %v2192_v6 }
 0x734   : > { %v2205_v18 = vmax.f32 %v2203_v47, 0.0  ;;  %v2206_v11 = vmax.f32 %v2204_v20, 0.0 }
 0x736   : > { %v2209_v12 = vcombine.low %v2205_v18, %v2206_v11 }
 0x738   : > { %2211 = vst [vmem:[%s318_s30] sm:$0xff] %v2209_v12 }
 0x739   : > { %2626 = shalt.err (!%p2623_p2)
}
 0x73a   : > { %s2627_s2 = scalar_lea.hbm %s3284_s20, 128  ;;  %s2631_s15 = scalar_lea.hbm %s3334_s6, 256 }
 0x73b   : > { %p2628_p6 = scmp.ne.s32.totalorder %s3284_s20, %s2627_s2  ;;  %p2632_p12 = scmp.lt.u32.totalorder %s3284_s20, %s3334_s6 }
 0x73c   : > { %p2633_p11 = scmp.lt.u32.totalorder %s2631_s15, %s2627_s2  ;;  %p2635_p10 = scmp.lt.u32.totalorder %s2627_s2, %s3284_s20 }
 0x73d   : > { %p2629_p8 = pnand %p2628_p6, %p3355_p13 }
 0x73e   : > { %p2634_p0 = por %p2633_p11, %p2632_p12 }
 0x73f   : > { %p2630_p4 = pneg %p2629_p8 }
 0x740   : > { %p2636_p3 = por %p2635_p10, %p2634_p0 }
 0x742   : > { %p2637_p7 = pnand %p2636_p3, %p2630_p4 }
 0x744   : > { %2640 = shalt.err (!%p2637_p7)
}
 0x745   : > { %2444 = dma.vmem_to_hbm [thread:$0]  (%p3355_p13), %s3286_s7, 128, %s3284_s20, %s2213_s27  }
 0x746 PF: > { %s2239_s17 = sand.u32 1, %s2675_s21   ;;  %p3356_p9 = scmp.ne.s32.totalorder %s3342_s28, 0 }
 0x747   : > { %p3357_p1 = scmp.ge.s32.totalorder %s2687_s24, 2  ;;  %s2240_s16 = scalar_lea.sflag [#allocation5], %s2239_s17 }
 0x749   : > { %p2458_p5 = pnand %p3357_p1, %p3356_p9 }
 0x74b   : > { %2670 = dma.done.wait (!%p2458_p5), %s2240_s16, 128  }
 0x74c   : > { %2672 = vsyncadd (!%p2458_p5), %s2240_s16, 4294967168  ;;  %p22_p2 = scmp.ge.s32.totalorder %s2806_s9, 4   ;;  %s3358_s21 = smov %s2679_s22 }
 0x74d   : > { %s3359_s22 = smov %s2683_s23  ;;  %s3360_s23 = smov %s2837_s13 }
 0x74e   : > { %s3361_s24 = smov %s2806_s9  ;;  %24 = sbr.rel (!%p22_p2) target bundleno = 10 (0xa), region = 107 }
 0x755   :  { %2245 = vsyncpa [#allocation4], 1 }
 0x756   :  { %2247 = vsyncpa [#allocation4 + $0x1], 1 }
 0x757   :  { %2248 = vsyncpa [#allocation7], 1 }
 0x758   :  { %2250 = vsyncpa [#allocation7 + $0x1], 1 }
 0x759   :  { %2251 = vsyncpa [#allocation5], 1 }
 0x75a   :  { %2253 = vsyncpa [#allocation5 + $0x1], 1 }

</bundles_post_ra>
